<compile_context>
chip_gen: v7x
topology: tpu7x:2x2x1
jax: 0.10.0
libtpu: 0.0.40
codegen_flags: <defaults>
</compile_context>

<pallas_src>
import jax
import jax.numpy as jnp
from jax.experimental import pallas as pl
from jax.experimental.pallas import tpu as pltpu

INPUT_DIM = 64 * 64  # fixed by the module: self.input_dim = 64 * 64


def _ae_kernel(x_ref, noise_ref, At_ref, w1t_ref, b1_ref, w2t_ref, b2_ref,
               wdt_ref, bd_ref, out_ref):
    """Fused forward pass of E2EAutoencoderMmnist for one batch tile.

    x_ref    : (TB, 4096)  f32  flattened images
    noise_ref: (TB, M)     f32  eval-mode measurement noise (std = noise_std)
    At_ref   : (4096, M)   bf16 A.weight.T          (no bias)
    w1t_ref  : (M, H1)     f32  encoder[0].weight.T  b1_ref: (1, H1)
    w2t_ref  : (H1, H2)    f32  encoder[2].weight.T  b2_ref: (1, H2)
    wdt_ref  : (H2, 4096)  bf16 decoder[0].weight.T  bd_ref: (1, 4096)
    out_ref  : (TB, 4096)  f32  sigmoid reconstruction
    """
    x = x_ref[...]

    # y = self.A(x_flat)  (no bias) + eval-mode Gaussian noise.
    # bf16 operands -> native MXU path, f32 accumulation.
    y = jnp.dot(x.astype(jnp.bfloat16), At_ref[...],
                preferred_element_type=jnp.float32)
    y = y + noise_ref[...]

    # encoder: Linear -> ReLU -> Linear -> ReLU  (tiny; keep f32)
    h = jnp.dot(y, w1t_ref[...], preferred_element_type=jnp.float32) + b1_ref[...]
    h = jnp.maximum(h, 0.0)
    h = jnp.dot(h, w2t_ref[...], preferred_element_type=jnp.float32) + b2_ref[...]
    h = jnp.maximum(h, 0.0)

    # decoder: Linear -> Sigmoid (bf16 weights, f32 accumulate / activation)
    r = jnp.dot(h.astype(jnp.bfloat16), wdt_ref[...],
                preferred_element_type=jnp.float32) + bd_ref[...]
    # sigmoid(r) == 0.5*(tanh(r/2)+1): single EUP op per element (cheaper than
    # exp + exact divide), mathematically identical up to rounding.
    out_ref[...] = 0.5 * (jnp.tanh(0.5 * r) + 1.0)


def init_params(key, num_measurements, layer_sizes):
    """Deterministic parameter init mirroring the module's __init__ shapes."""
    keys = jax.random.split(key, 2 + 2 * len(layer_sizes) + 2)
    ki = iter(keys)

    # A: Linear(4096 -> M, bias=False), weight ~ N(0, 1/M)  (explicit in torch)
    A_w = jax.random.normal(next(ki), (num_measurements, INPUT_DIM),
                            jnp.float32) * (1.0 / num_measurements)
    params = {"At": A_w.T.astype(jnp.bfloat16)}  # (4096, M), bf16 for HBM traffic

    # encoder Linear layers (PyTorch default init ~ U(-1/sqrt(fan_in), +))
    prev = num_measurements
    enc_wts, enc_bs = [], []
    for size in layer_sizes:
        bound = 1.0 / jnp.sqrt(prev)
        w = jax.random.uniform(next(ki), (size, prev), jnp.float32, -bound, bound)
        b = jax.random.uniform(next(ki), (size,), jnp.float32, -bound, bound)
        enc_wts.append(w.T)              # (prev, size)
        enc_bs.append(b.reshape(1, -1))  # (1, size)
        prev = size
    params["w1t"], params["w2t"] = enc_wts
    params["b1"], params["b2"] = enc_bs

    # decoder: Linear(prev -> 4096) + Sigmoid
    bound = 1.0 / jnp.sqrt(prev)
    wd = jax.random.uniform(next(ki), (INPUT_DIM, prev), jnp.float32, -bound, bound)
    bd = jax.random.uniform(next(ki), (INPUT_DIM,), jnp.float32, -bound, bound)
    params["wdt"] = wd.T.astype(jnp.bfloat16)  # (prev, 4096), bf16
    params["bd"] = bd.reshape(1, -1)           # (1, 4096)
    return params


_TPU_VMEM_BYTES = None


def _tpu_vmem_bytes():
    """Physical VMEM per TensorCore (trace-time query, cached)."""
    global _TPU_VMEM_BYTES
    if _TPU_VMEM_BYTES is None:
        try:
            _TPU_VMEM_BYTES = int(pltpu.get_tpu_info().vmem_capacity_bytes)
        except Exception:
            _TPU_VMEM_BYTES = 64 * 1024 * 1024  # conservative (v7x-class)
    return _TPU_VMEM_BYTES


def _pick_tb_and_vmem_limit(batch):
    """Generation-aware batch tile + VMEM limit.

    v5e/v6e (128 MiB): cap 1024 rows, ~100 MiB limit.
    v7x     (64  MiB): cap 512 rows,  ~56 MiB limit.
    For 8 < B <= 2*cap the tile is ~B/2 (rounded up to 8) so the grid has at
    least 2 steps and the 'parallel' axis can shard across v7x's two TCs.
    """
    vmem = _tpu_vmem_bytes()
    if vmem <= 64 * 1024 * 1024:
        cap, limit = 512, 56 * 1024 * 1024
    else:
        cap, limit = 1024, 100 * 1024 * 1024

    if batch <= 8:
        tb = batch                                   # equals full dim -> valid
    elif batch <= 2 * cap:
        half = -(-batch // 2)                        # cdiv(B, 2)
        tb = min(cap, ((half + 7) // 8) * 8)         # >=2 grid steps, mult. of 8
    else:
        tb = cap
    return tb, limit


@jax.jit
def e2e_autoencoder_forward(x, params, noise):
    """Eval-mode forward of E2EAutoencoderMmnist (noise always added)."""
    B = x.shape[0]
    M = params["At"].shape[1]
    H1 = params["w1t"].shape[1]
    H2 = params["w2t"].shape[1]
    x_flat = x.reshape(B, INPUT_DIM).astype(jnp.float32)

    TB, vmem_limit = _pick_tb_and_vmem_limit(B)
    grid = (pl.cdiv(B, TB),)

    # x / noise / out tiles move with the grid (default double-buffering);
    # weights & biases stay resident in VMEM (constant block index, single
    # buffer -> no re-DMA and no dead second buffer).
    resident = dict(pipeline_mode=pl.Buffered(1))
    in_specs = [
        pl.BlockSpec((TB, INPUT_DIM), lambda i: (i, 0)),                # x
        pl.BlockSpec((TB, M), lambda i: (i, 0)),                        # noise
        pl.BlockSpec((INPUT_DIM, M), lambda i: (0, 0), **resident),     # At
        pl.BlockSpec((M, H1), lambda i: (0, 0), **resident),            # w1t
        pl.BlockSpec((1, H1), lambda i: (0, 0), **resident),            # b1
        pl.BlockSpec((H1, H2), lambda i: (0, 0), **resident),           # w2t
        pl.BlockSpec((1, H2), lambda i: (0, 0), **resident),            # b2
        pl.BlockSpec((H2, INPUT_DIM), lambda i: (0, 0), **resident),    # wdt
        pl.BlockSpec((1, INPUT_DIM), lambda i: (0, 0), **resident),     # bd
    ]
    out_specs = pl.BlockSpec((TB, INPUT_DIM), lambda i: (i, 0))

    flops = 2 * B * (INPUT_DIM * M + M * H1 + H1 * H2 + H2 * INPUT_DIM)
    bytes_accessed = (
        2 * B * INPUT_DIM * 4                 # x in + recon out (f32)
        + B * M * 4                           # noise
        + INPUT_DIM * M * 2                   # At (bf16)
        + (M * H1 + H1 * H2) * 4              # encoder weights (f32)
        + H2 * INPUT_DIM * 2                  # wdt (bf16)
        + (H1 + H2 + INPUT_DIM) * 4           # biases
    )
    cost = pl.CostEstimate(flops=flops,
                           transcendentals=B * INPUT_DIM,   # tanh-based sigmoid
                           bytes_accessed=bytes_accessed)

    recon_flat = pl.pallas_call(
        _ae_kernel,
        out_shape=jax.ShapeDtypeStruct((B, INPUT_DIM), jnp.float32),
        grid=grid,
        in_specs=in_specs,
        out_specs=out_specs,
        compiler_params=pltpu.CompilerParams(
            dimension_semantics=("parallel",),     # megacore on v7x
            vmem_limit_bytes=vmem_limit,           # generation-aware
        ),
        cost_estimate=cost,
    )(x_flat, noise, params["At"], params["w1t"], params["b1"],
      params["w2t"], params["b2"], params["wdt"], params["bd"])

    return recon_flat.reshape(x.shape)  # recon.view_as(x)


if __name__ == "__main__":
    # hparams: num_measurements=32, layer_sizes=[32, 64], noise_std=0.1
    num_measurements = 32
    layer_sizes = [32, 64]
    noise_std = 0.1

    key = jax.random.PRNGKey(0)
    k_param, k_x, k_noise = jax.random.split(key, 3)

    B = 2
    x = jax.random.uniform(k_x, (B, 1, 64, 64), jnp.float32)  # NCHW, MNIST-like 64x64
    params = init_params(k_param, num_measurements, layer_sizes)

    # eval-mode noise: torch.normal(mean=0, std=noise_std, size=y.size())
    noise = noise_std * jax.random.normal(k_noise, (B, num_measurements), jnp.float32)

    recon = e2e_autoencoder_forward(x, params, noise)
    jax.block_until_ready(recon)
    assert recon.shape == x.shape and recon.dtype == jnp.float32
    assert bool(jnp.all(jnp.isfinite(recon)))
    assert bool(jnp.all((recon >= 0.0) & (recon <= 1.0)))  # sigmoid range
    print("KERNEL_OK")
</pallas_src>

<mosaic_0001>
module attributes {stable_mosaic.version = 11 : i64} {
  func.func @_ae_kernel(%arg0: i32, %arg1: memref<2x4096xf32, #tpu.memory_space<vmem>>, %arg2: memref<2x32xf32, #tpu.memory_space<vmem>>, %arg3: memref<4096x32xbf16, #tpu.memory_space<vmem>>, %arg4: memref<32x32xf32, #tpu.memory_space<vmem>>, %arg5: memref<1x32xf32, #tpu.memory_space<vmem>>, %arg6: memref<32x64xf32, #tpu.memory_space<vmem>>, %arg7: memref<1x64xf32, #tpu.memory_space<vmem>>, %arg8: memref<64x4096xbf16, #tpu.memory_space<vmem>>, %arg9: memref<1x4096xf32, #tpu.memory_space<vmem>>, %arg10: memref<2x4096xf32, #tpu.memory_space<vmem>>) attributes {dimension_semantics = [#tpu.dimension_semantics<parallel>], iteration_bounds = array<i64: 1>, scalar_prefetch = 0 : i64, scratch_operands = 0 : i64, tpu.core_type = #tpu.core_type<tc>, window_params = [{transform_indices = @transform_0, window_bounds = array<i64: 2, 4096>}, {transform_indices = @transform_1, window_bounds = array<i64: 2, 32>}, {pipeline_mode = #tpu.pipeline_mode<synchronous>, transform_indices = @transform_2, window_bounds = array<i64: 4096, 32>}, {pipeline_mode = #tpu.pipeline_mode<synchronous>, transform_indices = @transform_3, window_bounds = array<i64: 32, 32>}, {pipeline_mode = #tpu.pipeline_mode<synchronous>, transform_indices = @transform_4, window_bounds = array<i64: 1, 32>}, {pipeline_mode = #tpu.pipeline_mode<synchronous>, transform_indices = @transform_5, window_bounds = array<i64: 32, 64>}, {pipeline_mode = #tpu.pipeline_mode<synchronous>, transform_indices = @transform_6, window_bounds = array<i64: 1, 64>}, {pipeline_mode = #tpu.pipeline_mode<synchronous>, transform_indices = @transform_7, window_bounds = array<i64: 64, 4096>}, {pipeline_mode = #tpu.pipeline_mode<synchronous>, transform_indices = @transform_8, window_bounds = array<i64: 1, 4096>}, {transform_indices = @transform_9, window_bounds = array<i64: 2, 4096>}]} {
    %c0 = arith.constant 0 : index
    %c0_0 = arith.constant 0 : index
    %0 = vector.load %arg1[%c0, %c0_0] : memref<2x4096xf32, #tpu.memory_space<vmem>>, vector<2x4096xf32>
    %1 = arith.truncf %0 : vector<2x4096xf32> to vector<2x4096xbf16>
    %c0_1 = arith.constant 0 : index
    %c0_2 = arith.constant 0 : index
    %2 = vector.load %arg3[%c0_1, %c0_2] : memref<4096x32xbf16, #tpu.memory_space<vmem>>, vector<4096x32xbf16>
    %cst = arith.constant dense<0.000000e+00> : vector<2x32xf32>
    %3 = tpu.matmul %1, %2, %cst {dimension_numbers = #tpu.dot_dimension_numbers<[1], [0], [0], [1], [0, 0, 1, 1], [], []>} : vector<2x4096xbf16>, vector<4096x32xbf16>, vector<2x32xf32> -> vector<2x32xf32>
    %c0_3 = arith.constant 0 : index
    %c0_4 = arith.constant 0 : index
    %4 = vector.load %arg2[%c0_3, %c0_4] : memref<2x32xf32, #tpu.memory_space<vmem>>, vector<2x32xf32>
    %5 = arith.addf %3, %4 : vector<2x32xf32>
    %c0_5 = arith.constant 0 : index
    %c0_6 = arith.constant 0 : index
    %6 = vector.load %arg4[%c0_5, %c0_6] : memref<32x32xf32, #tpu.memory_space<vmem>>, vector<32x32xf32>
    %cst_7 = arith.constant dense<0.000000e+00> : vector<2x32xf32>
    %7 = tpu.matmul %5, %6, %cst_7 {dimension_numbers = #tpu.dot_dimension_numbers<[1], [0], [0], [1], [0, 0, 1, 1], [], []>} : vector<2x32xf32>, vector<32x32xf32>, vector<2x32xf32> -> vector<2x32xf32>
    %c0_8 = arith.constant 0 : index
    %c0_9 = arith.constant 0 : index
    %8 = vector.load %arg5[%c0_8, %c0_9] : memref<1x32xf32, #tpu.memory_space<vmem>>, vector<1x32xf32>
    %9 = vector.broadcast %8 : vector<1x32xf32> to vector<2x32xf32>
    %10 = arith.addf %7, %9 : vector<2x32xf32>
    %cst_10 = arith.constant 0.000000e+00 : f32
    %11 = vector.broadcast %cst_10 : f32 to vector<2x32xf32>
    %12 = arith.maximumf %10, %11 : vector<2x32xf32>
    %c0_11 = arith.constant 0 : index
    %c0_12 = arith.constant 0 : index
    %13 = vector.load %arg6[%c0_11, %c0_12] : memref<32x64xf32, #tpu.memory_space<vmem>>, vector<32x64xf32>
    %cst_13 = arith.constant dense<0.000000e+00> : vector<2x64xf32>
    %14 = tpu.matmul %12, %13, %cst_13 {dimension_numbers = #tpu.dot_dimension_numbers<[1], [0], [0], [1], [0, 0, 1, 1], [], []>} : vector<2x32xf32>, vector<32x64xf32>, vector<2x64xf32> -> vector<2x64xf32>
    %c0_14 = arith.constant 0 : index
    %c0_15 = arith.constant 0 : index
    %15 = vector.load %arg7[%c0_14, %c0_15] : memref<1x64xf32, #tpu.memory_space<vmem>>, vector<1x64xf32>
    %16 = vector.broadcast %15 : vector<1x64xf32> to vector<2x64xf32>
    %17 = arith.addf %14, %16 : vector<2x64xf32>
    %cst_16 = arith.constant 0.000000e+00 : f32
    %18 = vector.broadcast %cst_16 : f32 to vector<2x64xf32>
    %19 = arith.maximumf %17, %18 : vector<2x64xf32>
    %20 = arith.truncf %19 : vector<2x64xf32> to vector<2x64xbf16>
    %c0_17 = arith.constant 0 : index
    %c0_18 = arith.constant 0 : index
    %21 = vector.load %arg8[%c0_17, %c0_18] : memref<64x4096xbf16, #tpu.memory_space<vmem>>, vector<64x4096xbf16>
    %cst_19 = arith.constant dense<0.000000e+00> : vector<2x4096xf32>
    %22 = tpu.matmul %20, %21, %cst_19 {dimension_numbers = #tpu.dot_dimension_numbers<[1], [0], [0], [1], [0, 0, 1, 1], [], []>} : vector<2x64xbf16>, vector<64x4096xbf16>, vector<2x4096xf32> -> vector<2x4096xf32>
    %c0_20 = arith.constant 0 : index
    %c0_21 = arith.constant 0 : index
    %23 = vector.load %arg9[%c0_20, %c0_21] : memref<1x4096xf32, #tpu.memory_space<vmem>>, vector<1x4096xf32>
    %24 = vector.broadcast %23 : vector<1x4096xf32> to vector<2x4096xf32>
    %25 = arith.addf %22, %24 : vector<2x4096xf32>
    %cst_22 = arith.constant 5.000000e-01 : f32
    %26 = vector.broadcast %cst_22 : f32 to vector<2x4096xf32>
    %27 = arith.mulf %26, %25 : vector<2x4096xf32>
    %28 = math.tanh %27 : vector<2x4096xf32>
    %cst_23 = arith.constant 1.000000e+00 : f32
    %29 = vector.broadcast %cst_23 : f32 to vector<2x4096xf32>
    %30 = arith.addf %28, %29 : vector<2x4096xf32>
    %cst_24 = arith.constant 5.000000e-01 : f32
    %31 = vector.broadcast %cst_24 : f32 to vector<2x4096xf32>
    %32 = arith.mulf %31, %30 : vector<2x4096xf32>
    %c0_25 = arith.constant 0 : index
    %c0_26 = arith.constant 0 : index
    %33 = vector.load %arg10[%c0_25, %c0_26] : memref<2x4096xf32, #tpu.memory_space<vmem>>, vector<2x4096xf32>
    tpu.vector_store %arg10[%c0_25, %c0_26], %32 {strides = array<i32>} : memref<2x4096xf32, #tpu.memory_space<vmem>>, vector<2x4096xf32>,
    return
  }
  func.func @transform_0(%arg0: i32) -> (i32, i32) {
    %c0_i32 = arith.constant 0 : i32
    %c0_i32_0 = arith.constant 0 : i32
    return %arg0, %c0_i32 : i32, i32
  }
  func.func @transform_1(%arg0: i32) -> (i32, i32) {
    %c0_i32 = arith.constant 0 : i32
    %c0_i32_0 = arith.constant 0 : i32
    return %arg0, %c0_i32 : i32, i32
  }
  func.func @transform_2(%arg0: i32) -> (i32, i32) {
    %c0_i32 = arith.constant 0 : i32
    %c0_i32_0 = arith.constant 0 : i32
    %c0_i32_1 = arith.constant 0 : i32
    return %c0_i32, %c0_i32_0 : i32, i32
  }
  func.func @transform_3(%arg0: i32) -> (i32, i32) {
    %c0_i32 = arith.constant 0 : i32
    %c0_i32_0 = arith.constant 0 : i32
    %c0_i32_1 = arith.constant 0 : i32
    return %c0_i32, %c0_i32_0 : i32, i32
  }
  func.func @transform_4(%arg0: i32) -> (i32, i32) {
    %c0_i32 = arith.constant 0 : i32
    %c0_i32_0 = arith.constant 0 : i32
    %c0_i32_1 = arith.constant 0 : i32
    return %c0_i32, %c0_i32_0 : i32, i32
  }
  func.func @transform_5(%arg0: i32) -> (i32, i32) {
    %c0_i32 = arith.constant 0 : i32
    %c0_i32_0 = arith.constant 0 : i32
    %c0_i32_1 = arith.constant 0 : i32
    return %c0_i32, %c0_i32_0 : i32, i32
  }
  func.func @transform_6(%arg0: i32) -> (i32, i32) {
    %c0_i32 = arith.constant 0 : i32
    %c0_i32_0 = arith.constant 0 : i32
    %c0_i32_1 = arith.constant 0 : i32
    return %c0_i32, %c0_i32_0 : i32, i32
  }
  func.func @transform_7(%arg0: i32) -> (i32, i32) {
    %c0_i32 = arith.constant 0 : i32
    %c0_i32_0 = arith.constant 0 : i32
    %c0_i32_1 = arith.constant 0 : i32
    return %c0_i32, %c0_i32_0 : i32, i32
  }
  func.func @transform_8(%arg0: i32) -> (i32, i32) {
    %c0_i32 = arith.constant 0 : i32
    %c0_i32_0 = arith.constant 0 : i32
    %c0_i32_1 = arith.constant 0 : i32
    return %c0_i32, %c0_i32_0 : i32, i32
  }
  func.func @transform_9(%arg0: i32) -> (i32, i32) {
    %c0_i32 = arith.constant 0 : i32
    %c0_i32_0 = arith.constant 0 : i32
    return %arg0, %c0_i32 : i32, i32
  }
}

</mosaic_0001>

<bundles_post_ra>
// kernel: e2e_autoencoder_forward.1
= control target key start
LH: loop header
LB: loop body
LE: loop exit
PB: predicated region body
PF: predicated region fallthrough
CT: control target
= control target key end

     0   :  { %v6155_v22 = vmov 1983009808   ;;  %v53_v24 = vlaneseq  ;;  %vm6157_vm0 = vmmov 0   ;;  %vm2949_vm1 = vcmask 261120   ;;  %s7630_s2 = inlined_call_operand.vmem [shape: bf16[4096,32], index: 2, kind: input, shape index: {}]   ;;  %s7631_s0 = inlined_call_operand.vmem [shape: f32[2,4096], index: 0, kind: input, shape index: {}]   ;;  %s7632_s1 = inlined_call_operand.vmem [shape: f32[2,32], index: 1, kind: input, shape index: {}]   ;;  %s7633_s3 = inlined_call_operand.vmem [shape: f32[32,32], index: 3, kind: input, shape index: {}]   ;;  %s7634_s5 = inlined_call_operand.vmem [shape: f32[32,64], index: 5, kind: input, shape index: {}]   ;;  %s7635_s7 = inlined_call_operand.vmem [shape: bf16[64,4096], index: 7, kind: input, shape index: {}]   ;;  %s7636_s4 = inlined_call_operand.vmem [shape: f32[1,32], index: 4, kind: input, shape index: {}]   ;;  %s7637_s6 = inlined_call_operand.vmem [shape: f32[1,64], index: 6, kind: input, shape index: {}]   ;;  %s7638_s8 = inlined_call_operand.vmem [shape: f32[1,4096], index: 8, kind: input, shape index: {}]   ;;  %s7639_s9 = inlined_call_operand.vmem [shape: f32[2,4096], index: 9, kind: output, shape index: {}]  }
   0x1   :  { %v5827_v0 = vld [vmem:[%s7630_s2 + $0x40] sm:$0xff]   ;;  %v5831_v4 = vld [vmem:[%s7630_s2 + $0x48] sm:$0xff]   ;;  %v5835_v8 = vld [vmem:[%s7630_s2 + $0x50] sm:$0xff]   ;;  %v51_v23 = vunpack.c.l.s4 %v6155_v22  ;;  %vm4046_vm2 = vcmask 523264  }
   0x2   :  { %v5828_v1 = vld [vmem:[%s7630_s2 + $0xc0] sm:$0xff]   ;;  %5426 = vmatprep.subr.bf16.mxu0 %v5827_v0  ;;  %v5832_v5 = vld [vmem:[%s7630_s2 + $0xc8] sm:$0xff]   ;;  %v5836_v9 = vld [vmem:[%s7630_s2 + $0xd0] sm:$0xff]   ;;  %v6288_v30 = vshrl.u32 %v53_v24, 7 }
   0x3   :  { %v5829_v2 = vld [vmem:[%s7630_s2] sm:$0xff]   ;;  %5448 = vmatprep.subr.bf16.mxu1 %v5828_v1  ;;  %v5833_v6 = vld [vmem:[%s7630_s2 + $0x8] sm:$0xff]   ;;  %v5837_v10 = vld [vmem:[%s7630_s2 + $0x10] sm:$0xff]   ;;  %v52_v29 = vunpack.c.0.s8 %v51_v23 }
   0x4   :  { %v5830_v3 = vld [vmem:[%s7630_s2 + $0x80] sm:$0xff]   ;;  %5427 = vmatpush3.bf16.msra.mxu0 %v5829_v2  ;;  %v5834_v7 = vld [vmem:[%s7630_s2 + $0x88] sm:$0xff]   ;;  %v5838_v11 = vld [vmem:[%s7630_s2 + $0x90] sm:$0xff]  }
   0x5   :  { %5449 = vmatpush3.bf16.msra.mxu1 %v5830_v3  ;;  %5428 = vmatprep.subr.bf16.mxu0 %v5831_v4  ;;  %v5839_v12 = vld [vmem:[%s7630_s2 + $0x58] sm:$0xff]   ;;  %v5843_v16 = vld [vmem:[%s7630_s2 + $0x60] sm:$0xff]   ;;  %v5847_v20 = vld [vmem:[%s7630_s2 + $0x68] sm:$0xff]   ;;  %v6303_v35 = vsub.s32 %v52_v29, %v6288_v30 }
   0x6   :  { %5450 = vmatprep.subr.bf16.mxu1 %v5832_v5  ;;  %v5840_v13 = vld [vmem:[%s7630_s2 + $0xd8] sm:$0xff]   ;;  %v5844_v17 = vld [vmem:[%s7630_s2 + $0xe0] sm:$0xff]   ;;  %v5848_v21 = vld [vmem:[%s7630_s2 + $0xe8] sm:$0xff]  }
   0x7   :  { %v5841_v14 = vld [vmem:[%s7630_s2 + $0x18] sm:$0xff]   ;;  %v5845_v18 = vld [vmem:[%s7630_s2 + $0x20] sm:$0xff]   ;;  %v5849_v25 = vld [vmem:[%s7630_s2 + $0x28] sm:$0xff]  }
   0x8   :  { %5429 = vmatpush3.bf16.msra.mxu0 %v5833_v6  ;;  %v5842_v15 = vld [vmem:[%s7630_s2 + $0x98] sm:$0xff]   ;;  %v5846_v19 = vld [vmem:[%s7630_s2 + $0xa0] sm:$0xff]   ;;  %v5850_v26 = vld [vmem:[%s7630_s2 + $0xa8] sm:$0xff]  }
   0x9   :  { %5451 = vmatpush3.bf16.msra.mxu1 %v5834_v7  ;;  %5430 = vmatprep.subr.bf16.mxu0 %v5835_v8  ;;  %v5851_v27 = vld [vmem:[%s7630_s2 + $0x70] sm:$0xff]   ;;  %v5855_v33 = vld [vmem:[%s7630_s2 + $0x78] sm:$0xff]   ;;  %v33_v38 = vld [vmem:[%s7631_s0] sm:$0xff] }
   0xa   :  { %5452 = vmatprep.subr.bf16.mxu1 %v5836_v9  ;;  %v5852_v28 = vld [vmem:[%s7630_s2 + $0xf0] sm:$0xff]   ;;  %v5856_v34 = vld [vmem:[%s7630_s2 + $0xf8] sm:$0xff]   ;;  %v56_v39 = vrot.slane %v33_v38, %v6303_v35  ;;  %v49_v40 = vcombine.high %v33_v38, %v33_v38  ;;  %v5860_v41 = vld [vmem:[%s7630_s2 + $0x140] sm:$0xff]  }
   0xb   :  { %v5853_v31 = vld [vmem:[%s7630_s2 + $0x30] sm:$0xff]   ;;  %v5857_v36 = vld [vmem:[%s7630_s2 + $0x38] sm:$0xff]   ;;  %v5861_v42 = vld [vmem:[%s7630_s2 + $0x1c0] sm:$0xff]  }
   0xc   :  { %5431 = vmatpush3.bf16.msra.mxu0 %v5837_v10  ;;  %v5854_v32 = vld [vmem:[%s7630_s2 + $0xb0] sm:$0xff]   ;;  %v5858_v37 = vld [vmem:[%s7630_s2 + $0xb8] sm:$0xff]   ;;  %v64_v43 = vcombine.high %v56_v39, %v56_v39  ;;  %v63_v44 = vrot.slane %v49_v40, %v6303_v35  ;;  %v217_v45 = vpack.c.bf16 %v56_v39, %v56_v39  ;;  %v5862_v46 = vld [vmem:[%s7630_s2 + $0x100] sm:$0xff]  }
   0xd   :  { %5453 = vmatpush3.bf16.msra.mxu1 %v5838_v11  ;;  %5432 = vmatprep.subr.bf16.mxu0 %v5839_v12  ;;  %v5863_v49 = vld [vmem:[%s7630_s2 + $0x180] sm:$0xff]   ;;  %v5864_v51 = vld [vmem:[%s7630_s2 + $0x148] sm:$0xff]   ;;  %v5868_v56 = vld [vmem:[%s7630_s2 + $0x150] sm:$0xff]  }
   0xe   :  { %5454 = vmatprep.subr.bf16.mxu1 %v5840_v13  ;;  %v218_v47 = vpack.c.bf16 %v64_v43, %v64_v43  ;;  %v65_v48 = vcombine.high %v63_v44, %v63_v44  ;;  %v219_v50 = vpack.c.bf16 %v63_v44, %v63_v44  ;;  %v5865_v53 = vld [vmem:[%s7630_s2 + $0x1c8] sm:$0xff]   ;;  %v5869_v57 = vld [vmem:[%s7630_s2 + $0x1d0] sm:$0xff]   ;;  %v5872_v60 = vld [vmem:[%s7630_s2 + $0x158] sm:$0xff]  }
   0xf   :  { %v5866_v54 = vld [vmem:[%s7630_s2 + $0x108] sm:$0xff]   ;;  %v5870_v58 = vld [vmem:[%s7630_s2 + $0x110] sm:$0xff]   ;;  %v5873_v61 = vld [vmem:[%s7630_s2 + $0x1d8] sm:$0xff]  }
  0x10   :  { %5433 = vmatpush3.bf16.msra.mxu0 %v5841_v14  ;;  %2330 = vmatprep.mubr.bf16.mxu0 %v218_v47  ;;  %v220_v52 = vpack.c.bf16 %v65_v48, %v65_v48  ;;  %v5867_v55 = vld [vmem:[%s7630_s2 + $0x188] sm:$0xff]   ;;  %v5871_v59 = vld [vmem:[%s7630_s2 + $0x190] sm:$0xff]   ;;  %v5874_v62 = vld [vmem:[%s7630_s2 + $0x118] sm:$0xff]  }
  0x11   :  { %5455 = vmatpush3.bf16.msra.mxu1 %v5842_v15  ;;  %5434 = vmatprep.subr.bf16.mxu0 %v5843_v16  ;;  %v5875_v63 = vld [vmem:[%s7630_s2 + $0x198] sm:$0xff]   ;;  %v5876_v0 = vld [vmem:[%s7630_s2 + $0x160] sm:$0xff]   ;;  %v5880_v4 = vld [vmem:[%s7630_s2 + $0x168] sm:$0xff]  }
  0x12   :  { %5456 = vmatprep.subr.bf16.mxu1 %v5844_v17  ;;  %2370 = vmatprep.mubr.bf16.mxu1 %v220_v52  ;;  %v5877_v1 = vld [vmem:[%s7630_s2 + $0x1e0] sm:$0xff]   ;;  %v5881_v5 = vld [vmem:[%s7630_s2 + $0x1e8] sm:$0xff]   ;;  %v5884_v8 = vld [vmem:[%s7630_s2 + $0x170] sm:$0xff]  }
  0x13   :  { %v5878_v2 = vld [vmem:[%s7630_s2 + $0x120] sm:$0xff]   ;;  %v5882_v6 = vld [vmem:[%s7630_s2 + $0x128] sm:$0xff]   ;;  %v5885_v9 = vld [vmem:[%s7630_s2 + $0x1f0] sm:$0xff]  }
  0x14   :  { %5435 = vmatpush3.bf16.msra.mxu0 %v5845_v18  ;;  %v5879_v3 = vld [vmem:[%s7630_s2 + $0x1a0] sm:$0xff]   ;;  %v5883_v7 = vld [vmem:[%s7630_s2 + $0x1a8] sm:$0xff]   ;;  %v5886_v10 = vld [vmem:[%s7630_s2 + $0x130] sm:$0xff]  }
  0x15   :  { %5457 = vmatpush3.bf16.msra.mxu1 %v5846_v19  ;;  %5436 = vmatprep.subr.bf16.mxu0 %v5847_v20  ;;  %v5887_v11 = vld [vmem:[%s7630_s2 + $0x1b0] sm:$0xff]   ;;  %v5888_v12 = vld [vmem:[%s7630_s2 + $0x178] sm:$0xff]   ;;  %v34_v15 = vld [vmem:[%s7631_s0 + $0x8] sm:$0xff] }
  0x16   :  { %5458 = vmatprep.subr.bf16.mxu1 %v5848_v21  ;;  %v5889_v13 = vld [vmem:[%s7630_s2 + $0x1f8] sm:$0xff]   ;;  %v73_v17 = vrot.slane %v34_v15, %v6303_v35  ;;  %v66_v18 = vcombine.high %v34_v15, %v34_v15  ;;  %v5893_v19 = vld [vmem:[%s7630_s2 + $0x240] sm:$0xff]   ;;  %v5897_v29 = vld [vmem:[%s7630_s2 + $0x248] sm:$0xff]  }
  0x17   :  { %v5890_v14 = vld [vmem:[%s7630_s2 + $0x138] sm:$0xff]   ;;  %v5894_v22 = vld [vmem:[%s7630_s2 + $0x2c0] sm:$0xff]   ;;  %v5903_v38 = vld [vmem:[%s7630_s2 + $0x210] sm:$0xff]  }
  0x18   :  { %5437 = vmatpush3.bf16.msra.mxu0 %v5849_v25  ;;  %v5891_v16 = vld [vmem:[%s7630_s2 + $0x1b8] sm:$0xff]   ;;  %v81_v20 = vcombine.high %v73_v17, %v73_v17  ;;  %v80_v21 = vrot.slane %v66_v18, %v6303_v35  ;;  %v221_v23 = vpack.c.bf16 %v73_v17, %v73_v17  ;;  %v5895_v24 = vld [vmem:[%s7630_s2 + $0x200] sm:$0xff]   ;;  %v5904_v39 = vld [vmem:[%s7630_s2 + $0x290] sm:$0xff]  }
  0x19   :  { %5459 = vmatpush3.bf16.msra.mxu1 %v5850_v26  ;;  %5438 = vmatprep.subr.bf16.mxu0 %v5851_v27  ;;  %v5896_v27 = vld [vmem:[%s7630_s2 + $0x280] sm:$0xff]   ;;  %v5905_v40 = vld [vmem:[%s7630_s2 + $0x258] sm:$0xff]   ;;  %v5913_v48 = vld [vmem:[%s7630_s2 + $0x268] sm:$0xff]  }
  0x1a   :  { %5460 = vmatprep.subr.bf16.mxu1 %v5852_v28  ;;  %v222_v25 = vpack.c.bf16 %v81_v20, %v81_v20  ;;  %v82_v26 = vcombine.high %v80_v21, %v80_v21  ;;  %v223_v28 = vpack.c.bf16 %v80_v21, %v80_v21  ;;  %v5908_v43 = vld [vmem:[%s7630_s2 + $0x298] sm:$0xff]   ;;  %v5909_v44 = vld [vmem:[%s7630_s2 + $0x260] sm:$0xff]   ;;  %v5917_v52 = vld [vmem:[%s7630_s2 + $0x270] sm:$0xff]  }
  0x1b   :  { %v5912_v47 = vld [vmem:[%s7630_s2 + $0x2a0] sm:$0xff]   ;;  %v5935_v15 = vld [vmem:[%s7630_s2 + $0x3d0] sm:$0xff]   ;;  %v5938_v18 = vld [vmem:[%s7630_s2 + $0x358] sm:$0xff]  }
  0x1c   :  { %5439 = vmatpush3.bf16.msra.mxu0 %v5853_v31  ;;  %v224_v31 = vpack.c.bf16 %v82_v26, %v82_v26  ;;  %v5937_v17 = vld [vmem:[%s7630_s2 + $0x390] sm:$0xff]   ;;  %v5940_v20 = vld [vmem:[%s7630_s2 + $0x318] sm:$0xff]   ;;  %v5946_v26 = vld [vmem:[%s7630_s2 + $0x368] sm:$0xff]  }
  0x1d   :  { %5461 = vmatpush3.bf16.msra.mxu1 %v5854_v32  ;;  %5440 = vmatprep.subr.bf16.mxu0 %v5855_v33  ;;  %v5898_v32 = vld [vmem:[%s7630_s2 + $0x2c8] sm:$0xff]   ;;  %v5941_v21 = vld [vmem:[%s7630_s2 + $0x398] sm:$0xff]  }
  0x1e   :  { %5462 = vmatprep.subr.bf16.mxu1 %v5856_v34  ;;  %v5899_v33 = vld [vmem:[%s7630_s2 + $0x208] sm:$0xff]  }
  0x1f   :  { %v5900_v34 = vld [vmem:[%s7630_s2 + $0x288] sm:$0xff]  }
  0x20   :  { %5441 = vmatpush3.bf16.msra.mxu0 %v5857_v36  ;;  %v5901_v36 = vld [vmem:[%s7630_s2 + $0x250] sm:$0xff]  }
  0x21   :  { %5463 = vmatpush3.bf16.msra.mxu1 %v5858_v37  ;;  %5470 = vmatprep.subr.bf16.mxu0 %v5860_v41  ;;  %v5902_v37 = vld [vmem:[%s7630_s2 + $0x2d0] sm:$0xff]   ;;  %v5906_v41 = vld [vmem:[%s7630_s2 + $0x2d8] sm:$0xff]  }
  0x22   :  { %5492 = vmatprep.subr.bf16.mxu1 %v5861_v42  ;;  %v5907_v42 = vld [vmem:[%s7630_s2 + $0x218] sm:$0xff]  }
  0x23   :  { %2331 = vmatmul.mubr.bf16.vlgmr.msra.gmra.mrb[0].mxu0 %v217_v45  ;;  %v5910_v45 = vld [vmem:[%s7630_s2 + $0x2e0] sm:$0xff]  }
  0x24   :  { %5471 = vmatpush3.bf16.msra.mxu0 %v5862_v46  ;;  %2371 = vmatmul.mubr.bf16.vlgmr.msra.gmra.mrb[0].mxu1 %v219_v50  ;;  %v5911_v46 = vld [vmem:[%s7630_s2 + $0x220] sm:$0xff]   ;;  %v5915_v50 = vld [vmem:[%s7630_s2 + $0x228] sm:$0xff]  }
  0x25   :  { %5472 = vmatprep.subr.bf16.mxu0 %v5864_v51  ;;  %5493 = vmatpush3.bf16.msra.mxu1 %v5863_v49  ;;  %v5914_v49 = vld [vmem:[%s7630_s2 + $0x2e8] sm:$0xff]  }
  0x26   :  { %5494 = vmatprep.subr.bf16.mxu1 %v5865_v53  ;;  %2410 = vmatprep.mubr.bf16.mxu0 %v222_v25  ;;  %v5916_v51 = vld [vmem:[%s7630_s2 + $0x2a8] sm:$0xff]   ;;  %v5918_v53 = vld [vmem:[%s7630_s2 + $0x2f0] sm:$0xff]   ;;  %v5945_v25 = vld [vmem:[%s7630_s2 + $0x3a0] sm:$0xff]  }
  0x27   :  { %2450 = vmatprep.mubr.bf16.mxu1 %v224_v31  ;;  %v5950_v31 = vld [vmem:[%s7630_s2 + $0x370] sm:$0xff]  }
  0x28   :  { %5473 = vmatpush3.bf16.msra.mxu0 %v5866_v54  ;;  %v5919_v54 = vld [vmem:[%s7630_s2 + $0x230] sm:$0xff]  }
  0x29   :  { %5474 = vmatprep.subr.bf16.mxu0 %v5868_v56  ;;  %5495 = vmatpush3.bf16.msra.mxu1 %v5867_v55  ;;  %v5920_v55 = vld [vmem:[%s7630_s2 + $0x2b0] sm:$0xff]   ;;  %v5921_v56 = vld [vmem:[%s7630_s2 + $0x278] sm:$0xff]  }
  0x2a   :  { %5496 = vmatprep.subr.bf16.mxu1 %v5869_v57  ;;  %v5922_v57 = vld [vmem:[%s7630_s2 + $0x2f8] sm:$0xff]  }
  0x2c   :  { %5475 = vmatpush3.bf16.msra.mxu0 %v5870_v58  ;;  %v5923_v58 = vld [vmem:[%s7630_s2 + $0x238] sm:$0xff]  }
  0x2d   :  { %5476 = vmatprep.subr.bf16.mxu0 %v5872_v60  ;;  %5497 = vmatpush3.bf16.msra.mxu1 %v5871_v59  ;;  %v35_v59 = vld [vmem:[%s7631_s0 + $0x10] sm:$0xff]  ;;  %v5924_v60 = vld [vmem:[%s7630_s2 + $0x2b8] sm:$0xff]  }
  0x2e   :  { %5498 = vmatprep.subr.bf16.mxu1 %v5873_v61  ;;  %v90_v61 = vrot.slane %v35_v59, %v6303_v35 }
  0x30   :  { %5477 = vmatpush3.bf16.msra.mxu0 %v5874_v62  ;;  %v83_v62 = vcombine.high %v35_v59, %v35_v59  ;;  %v5968_v59 = vld [vmem:[%s7630_s2 + $0x4d0] sm:$0xff]  }
  0x31   :  { %5478 = vmatprep.subr.bf16.mxu0 %v5876_v0  ;;  %5499 = vmatpush3.bf16.msra.mxu1 %v5875_v63  ;;  %v5926_v63 = vld [vmem:[%s7630_s2 + $0x340] sm:$0xff]   ;;  %v98_v0 = vcombine.high %v90_v61, %v90_v61 }
  0x32   :  { %5500 = vmatprep.subr.bf16.mxu1 %v5877_v1  ;;  %v97_v1 = vrot.slane %v83_v62, %v6303_v35  ;;  %v5971_v62 = vld [vmem:[%s7630_s2 + $0x458] sm:$0xff]  }
  0x34   :  { %5479 = vmatpush3.bf16.msra.mxu0 %v5878_v2  ;;  %v5927_v2 = vld [vmem:[%s7630_s2 + $0x3c0] sm:$0xff]  }
  0x35   :  { %5480 = vmatprep.subr.bf16.mxu0 %v5880_v4  ;;  %5501 = vmatpush3.bf16.msra.mxu1 %v5879_v3  ;;  %v225_v3 = vpack.c.bf16 %v90_v61, %v90_v61  ;;  %v5928_v4 = vld [vmem:[%s7630_s2 + $0x300] sm:$0xff]   ;;  %v5970_v61 = vld [vmem:[%s7630_s2 + $0x490] sm:$0xff]  }
  0x36   :  { %5502 = vmatprep.subr.bf16.mxu1 %v5881_v5  ;;  %v226_v5 = vpack.c.bf16 %v98_v0, %v98_v0  ;;  %v5973_v0 = vld [vmem:[%s7630_s2 + $0x418] sm:$0xff]  }
  0x38   :  { %5481 = vmatpush3.bf16.msra.mxu0 %v5882_v6  ;;  %v99_v6 = vcombine.high %v97_v1, %v97_v1 }
  0x39   :  { %5482 = vmatprep.subr.bf16.mxu0 %v5884_v8  ;;  %5503 = vmatpush3.bf16.msra.mxu1 %v5883_v7  ;;  %v5929_v7 = vld [vmem:[%s7630_s2 + $0x380] sm:$0xff]   ;;  %v227_v8 = vpack.c.bf16 %v97_v1, %v97_v1  ;;  %v5974_v1 = vld [vmem:[%s7630_s2 + $0x498] sm:$0xff]  }
  0x3a   :  { %5504 = vmatprep.subr.bf16.mxu1 %v5885_v9  ;;  %v5930_v9 = vld [vmem:[%s7630_s2 + $0x348] sm:$0xff]  }
  0x3c   :  { %5483 = vmatpush3.bf16.msra.mxu0 %v5886_v10  ;;  %v228_v10 = vpack.c.bf16 %v99_v6, %v99_v6  ;;  %v5979_v6 = vld [vmem:[%s7630_s2 + $0x468] sm:$0xff]  }
  0x3d   :  { %5484 = vmatprep.subr.bf16.mxu0 %v5888_v12  ;;  %5505 = vmatpush3.bf16.msra.mxu1 %v5887_v11  ;;  %v5931_v11 = vld [vmem:[%s7630_s2 + $0x3c8] sm:$0xff]  }
  0x3e   :  { %5506 = vmatprep.subr.bf16.mxu1 %v5889_v13  ;;  %v5932_v12 = vld [vmem:[%s7630_s2 + $0x308] sm:$0xff]  }
  0x3f   :  { %v5933_v13 = vld [vmem:[%s7630_s2 + $0x388] sm:$0xff]  }
  0x40   :  { %5485 = vmatpush3.bf16.msra.mxu0 %v5890_v14  ;;  %v5934_v14 = vld [vmem:[%s7630_s2 + $0x350] sm:$0xff]  }
  0x41   :  { %5514 = vmatprep.subr.bf16.mxu0 %v5893_v19  ;;  %5507 = vmatpush3.bf16.msra.mxu1 %v5891_v16  ;;  %v5936_v16 = vld [vmem:[%s7630_s2 + $0x310] sm:$0xff]   ;;  %v5939_v19 = vld [vmem:[%s7630_s2 + $0x3d8] sm:$0xff]  }
  0x42   :  { %5536 = vmatprep.subr.bf16.mxu1 %v5894_v22  ;;  %v5942_v22 = vld [vmem:[%s7630_s2 + $0x360] sm:$0xff]  }
  0x43   :  { %2411 = vmatmul.mubr.bf16.vlgmr.msra.gmra.mrb[4].mxu0 %v221_v23  ;;  %v5943_v23 = vld [vmem:[%s7630_s2 + $0x3e0] sm:$0xff]  }
  0x44   :  { %5515 = vmatpush3.bf16.msra.mxu0 %v5895_v24  ;;  %2451 = vmatmul.mubr.bf16.vlgmr.msra.gmra.mrb[4].mxu1 %v223_v28  ;;  %v5944_v24 = vld [vmem:[%s7630_s2 + $0x320] sm:$0xff]   ;;  %v5948_v28 = vld [vmem:[%s7630_s2 + $0x328] sm:$0xff]  }
  0x45   :  { %5516 = vmatprep.subr.bf16.mxu0 %v5897_v29  ;;  %5537 = vmatpush3.bf16.msra.mxu1 %v5896_v27  ;;  %v5947_v27 = vld [vmem:[%s7630_s2 + $0x3e8] sm:$0xff]  }
  0x46   :  { %5538 = vmatprep.subr.bf16.mxu1 %v5898_v32  ;;  %2490 = vmatprep.mubr.bf16.mxu0 %v226_v5  ;;  %v5949_v29 = vld [vmem:[%s7630_s2 + $0x3a8] sm:$0xff]   ;;  %v5951_v32 = vld [vmem:[%s7630_s2 + $0x3f0] sm:$0xff]   ;;  %v5978_v5 = vld [vmem:[%s7630_s2 + $0x4a0] sm:$0xff]  }
  0x47   :  { %2530 = vmatprep.mubr.bf16.mxu1 %v228_v10  ;;  %v5983_v10 = vld [vmem:[%s7630_s2 + $0x470] sm:$0xff]  }
  0x48   :  { %5517 = vmatpush3.bf16.msra.mxu0 %v5899_v33  ;;  %v5952_v33 = vld [vmem:[%s7630_s2 + $0x330] sm:$0xff]  }
  0x49   :  { %5518 = vmatprep.subr.bf16.mxu0 %v5901_v36  ;;  %5539 = vmatpush3.bf16.msra.mxu1 %v5900_v34  ;;  %v5953_v34 = vld [vmem:[%s7630_s2 + $0x3b0] sm:$0xff]   ;;  %v5954_v36 = vld [vmem:[%s7630_s2 + $0x378] sm:$0xff]  }
  0x4a   :  { %5540 = vmatprep.subr.bf16.mxu1 %v5902_v37  ;;  %v5955_v37 = vld [vmem:[%s7630_s2 + $0x3f8] sm:$0xff]  }
  0x4c   :  { %5519 = vmatpush3.bf16.msra.mxu0 %v5903_v38  ;;  %v5956_v38 = vld [vmem:[%s7630_s2 + $0x338] sm:$0xff]  }
  0x4d   :  { %5520 = vmatprep.subr.bf16.mxu0 %v5905_v40  ;;  %5541 = vmatpush3.bf16.msra.mxu1 %v5904_v39  ;;  %v36_v39 = vld [vmem:[%s7631_s0 + $0x18] sm:$0xff] }
  0x4e   :  { %5542 = vmatprep.subr.bf16.mxu1 %v5906_v41  ;;  %v107_v40 = vrot.slane %v36_v39, %v6303_v35  ;;  %v100_v41 = vcombine.high %v36_v39, %v36_v39  ;;  %v6001_v39 = vld [vmem:[%s7630_s2 + $0x5d0] sm:$0xff]  }
  0x50   :  { %5521 = vmatpush3.bf16.msra.mxu0 %v5907_v42  ;;  %v5959_v42 = vld [vmem:[%s7630_s2 + $0x440] sm:$0xff]  }
  0x51   :  { %5522 = vmatprep.subr.bf16.mxu0 %v5909_v44  ;;  %5543 = vmatpush3.bf16.msra.mxu1 %v5908_v43  ;;  %v5957_v43 = vld [vmem:[%s7630_s2 + $0x3b8] sm:$0xff]   ;;  %v115_v44 = vcombine.high %v107_v40, %v107_v40 }
  0x52   :  { %5544 = vmatprep.subr.bf16.mxu1 %v5910_v45  ;;  %v114_v45 = vrot.slane %v100_v41, %v6303_v35  ;;  %v6003_v41 = vld [vmem:[%s7630_s2 + $0x590] sm:$0xff]  }
  0x54   :  { %5523 = vmatpush3.bf16.msra.mxu0 %v5911_v46  ;;  %v5960_v46 = vld [vmem:[%s7630_s2 + $0x4c0] sm:$0xff]  }
  0x55   :  { %5524 = vmatprep.subr.bf16.mxu0 %v5913_v48  ;;  %5545 = vmatpush3.bf16.msra.mxu1 %v5912_v47  ;;  %v229_v47 = vpack.c.bf16 %v107_v40, %v107_v40  ;;  %v5961_v48 = vld [vmem:[%s7630_s2 + $0x400] sm:$0xff]   ;;  %v6002_v40 = vld [vmem:[%s7630_s2 + $0x510] sm:$0xff]  }
  0x56   :  { %5546 = vmatprep.subr.bf16.mxu1 %v5914_v49  ;;  %v230_v49 = vpack.c.bf16 %v115_v44, %v115_v44  ;;  %v6006_v44 = vld [vmem:[%s7630_s2 + $0x518] sm:$0xff]  }
  0x58   :  { %5525 = vmatpush3.bf16.msra.mxu0 %v5915_v50  ;;  %v116_v50 = vcombine.high %v114_v45, %v114_v45 }
  0x59   :  { %5526 = vmatprep.subr.bf16.mxu0 %v5917_v52  ;;  %5547 = vmatpush3.bf16.msra.mxu1 %v5916_v51  ;;  %v5962_v51 = vld [vmem:[%s7630_s2 + $0x480] sm:$0xff]   ;;  %v231_v52 = vpack.c.bf16 %v114_v45, %v114_v45  ;;  %v6007_v45 = vld [vmem:[%s7630_s2 + $0x598] sm:$0xff]  }
  0x5a   :  { %5548 = vmatprep.subr.bf16.mxu1 %v5918_v53  ;;  %v5963_v53 = vld [vmem:[%s7630_s2 + $0x448] sm:$0xff]  }
  0x5c   :  { %5527 = vmatpush3.bf16.msra.mxu0 %v5919_v54  ;;  %v232_v54 = vpack.c.bf16 %v116_v50, %v116_v50  ;;  %v6012_v50 = vld [vmem:[%s7630_s2 + $0x568] sm:$0xff]  }
  0x5d   :  { %5528 = vmatprep.subr.bf16.mxu0 %v5921_v56  ;;  %5549 = vmatpush3.bf16.msra.mxu1 %v5920_v55  ;;  %v5964_v55 = vld [vmem:[%s7630_s2 + $0x4c8] sm:$0xff]  }
  0x5e   :  { %5550 = vmatprep.subr.bf16.mxu1 %v5922_v57  ;;  %v5965_v56 = vld [vmem:[%s7630_s2 + $0x408] sm:$0xff]  }
  0x5f   :  { %v5966_v57 = vld [vmem:[%s7630_s2 + $0x488] sm:$0xff]  }
  0x60   :  { %5529 = vmatpush3.bf16.msra.mxu0 %v5923_v58  ;;  %v5967_v58 = vld [vmem:[%s7630_s2 + $0x450] sm:$0xff]  }
  0x61   :  { %5558 = vmatprep.subr.bf16.mxu0 %v5926_v63  ;;  %5551 = vmatpush3.bf16.msra.mxu1 %v5924_v60  ;;  %v5969_v60 = vld [vmem:[%s7630_s2 + $0x410] sm:$0xff]   ;;  %v5972_v63 = vld [vmem:[%s7630_s2 + $0x4d8] sm:$0xff]  }
  0x62   :  { %5580 = vmatprep.subr.bf16.mxu1 %v5927_v2  ;;  %v5975_v2 = vld [vmem:[%s7630_s2 + $0x460] sm:$0xff]  }
  0x63   :  { %2491 = vmatmul.mubr.bf16.vlgmr.msra.gmra.mrb[8].mxu0 %v225_v3  ;;  %v5976_v3 = vld [vmem:[%s7630_s2 + $0x4e0] sm:$0xff]  }
  0x64   :  { %5559 = vmatpush3.bf16.msra.mxu0 %v5928_v4  ;;  %2531 = vmatmul.mubr.bf16.vlgmr.msra.gmra.mrb[8].mxu1 %v227_v8  ;;  %v5977_v4 = vld [vmem:[%s7630_s2 + $0x420] sm:$0xff]   ;;  %v5981_v8 = vld [vmem:[%s7630_s2 + $0x428] sm:$0xff]  }
  0x65   :  { %5560 = vmatprep.subr.bf16.mxu0 %v5930_v9  ;;  %5581 = vmatpush3.bf16.msra.mxu1 %v5929_v7  ;;  %v5980_v7 = vld [vmem:[%s7630_s2 + $0x4e8] sm:$0xff]  }
  0x66   :  { %5582 = vmatprep.subr.bf16.mxu1 %v5931_v11  ;;  %2570 = vmatprep.mubr.bf16.mxu0 %v230_v49  ;;  %v5982_v9 = vld [vmem:[%s7630_s2 + $0x4a8] sm:$0xff]   ;;  %v5984_v11 = vld [vmem:[%s7630_s2 + $0x4f0] sm:$0xff]   ;;  %v6011_v49 = vld [vmem:[%s7630_s2 + $0x5a0] sm:$0xff]  }
  0x67   :  { %2610 = vmatprep.mubr.bf16.mxu1 %v232_v54  ;;  %v6016_v54 = vld [vmem:[%s7630_s2 + $0x570] sm:$0xff]  }
  0x68   :  { %5561 = vmatpush3.bf16.msra.mxu0 %v5932_v12  ;;  %v5985_v12 = vld [vmem:[%s7630_s2 + $0x430] sm:$0xff]  }
  0x69   :  { %5562 = vmatprep.subr.bf16.mxu0 %v5934_v14  ;;  %5583 = vmatpush3.bf16.msra.mxu1 %v5933_v13  ;;  %v5986_v13 = vld [vmem:[%s7630_s2 + $0x4b0] sm:$0xff]   ;;  %v5987_v14 = vld [vmem:[%s7630_s2 + $0x478] sm:$0xff]  }
  0x6a   :  { %5584 = vmatprep.subr.bf16.mxu1 %v5935_v15  ;;  %v5988_v15 = vld [vmem:[%s7630_s2 + $0x4f8] sm:$0xff]  }
  0x6c   :  { %5563 = vmatpush3.bf16.msra.mxu0 %v5936_v16  ;;  %v5989_v16 = vld [vmem:[%s7630_s2 + $0x438] sm:$0xff]  }
  0x6d   :  { %5564 = vmatprep.subr.bf16.mxu0 %v5938_v18  ;;  %5585 = vmatpush3.bf16.msra.mxu1 %v5937_v17  ;;  %v37_v17 = vld [vmem:[%s7631_s0 + $0x20] sm:$0xff]  ;;  %v5990_v18 = vld [vmem:[%s7630_s2 + $0x4b8] sm:$0xff]  }
  0x6e   :  { %5586 = vmatprep.subr.bf16.mxu1 %v5939_v19  ;;  %v124_v19 = vrot.slane %v37_v17, %v6303_v35 }
  0x70   :  { %5565 = vmatpush3.bf16.msra.mxu0 %v5940_v20  ;;  %v117_v20 = vcombine.high %v37_v17, %v37_v17  ;;  %v6034_v17 = vld [vmem:[%s7630_s2 + $0x6d0] sm:$0xff]  }
  0x71   :  { %5566 = vmatprep.subr.bf16.mxu0 %v5942_v22  ;;  %5587 = vmatpush3.bf16.msra.mxu1 %v5941_v21  ;;  %v5992_v21 = vld [vmem:[%s7630_s2 + $0x540] sm:$0xff]   ;;  %v132_v22 = vcombine.high %v124_v19, %v124_v19 }
  0x72   :  { %5588 = vmatprep.subr.bf16.mxu1 %v5943_v23  ;;  %v131_v23 = vrot.slane %v117_v20, %v6303_v35  ;;  %v6037_v20 = vld [vmem:[%s7630_s2 + $0x658] sm:$0xff]  }
  0x74   :  { %5567 = vmatpush3.bf16.msra.mxu0 %v5944_v24  ;;  %v5993_v24 = vld [vmem:[%s7630_s2 + $0x5c0] sm:$0xff]  }
  0x75   :  { %5568 = vmatprep.subr.bf16.mxu0 %v5946_v26  ;;  %5589 = vmatpush3.bf16.msra.mxu1 %v5945_v25  ;;  %v233_v25 = vpack.c.bf16 %v124_v19, %v124_v19  ;;  %v5994_v26 = vld [vmem:[%s7630_s2 + $0x500] sm:$0xff]   ;;  %v6036_v19 = vld [vmem:[%s7630_s2 + $0x690] sm:$0xff]  }
  0x76   :  { %5590 = vmatprep.subr.bf16.mxu1 %v5947_v27  ;;  %v234_v27 = vpack.c.bf16 %v132_v22, %v132_v22  ;;  %v6039_v22 = vld [vmem:[%s7630_s2 + $0x618] sm:$0xff]  }
  0x78   :  { %5569 = vmatpush3.bf16.msra.mxu0 %v5948_v28  ;;  %v133_v28 = vcombine.high %v131_v23, %v131_v23 }
  0x79   :  { %5570 = vmatprep.subr.bf16.mxu0 %v5950_v31  ;;  %5591 = vmatpush3.bf16.msra.mxu1 %v5949_v29  ;;  %v5995_v29 = vld [vmem:[%s7630_s2 + $0x580] sm:$0xff]   ;;  %v235_v31 = vpack.c.bf16 %v131_v23, %v131_v23  ;;  %v6040_v23 = vld [vmem:[%s7630_s2 + $0x698] sm:$0xff]  }
  0x7a   :  { %5592 = vmatprep.subr.bf16.mxu1 %v5951_v32  ;;  %v5996_v32 = vld [vmem:[%s7630_s2 + $0x548] sm:$0xff]  }
  0x7c   :  { %5571 = vmatpush3.bf16.msra.mxu0 %v5952_v33  ;;  %v236_v33 = vpack.c.bf16 %v133_v28, %v133_v28  ;;  %v6045_v28 = vld [vmem:[%s7630_s2 + $0x668] sm:$0xff]  }
  0x7d   :  { %5572 = vmatprep.subr.bf16.mxu0 %v5954_v36  ;;  %5593 = vmatpush3.bf16.msra.mxu1 %v5953_v34  ;;  %v5997_v34 = vld [vmem:[%s7630_s2 + $0x5c8] sm:$0xff]  }
  0x7e   :  { %5594 = vmatprep.subr.bf16.mxu1 %v5955_v37  ;;  %v5998_v36 = vld [vmem:[%s7630_s2 + $0x508] sm:$0xff]  }
  0x7f   :  { %v5999_v37 = vld [vmem:[%s7630_s2 + $0x588] sm:$0xff]  }
  0x80   :  { %5573 = vmatpush3.bf16.msra.mxu0 %v5956_v38  ;;  %v6000_v38 = vld [vmem:[%s7630_s2 + $0x550] sm:$0xff]  }
  0x81   :  { %5602 = vmatprep.subr.bf16.mxu0 %v5959_v42  ;;  %5595 = vmatpush3.bf16.msra.mxu1 %v5957_v43  ;;  %v6004_v42 = vld [vmem:[%s7630_s2 + $0x558] sm:$0xff]  }
  0x82   :  { %5624 = vmatprep.subr.bf16.mxu1 %v5960_v46  ;;  %v6005_v43 = vld [vmem:[%s7630_s2 + $0x5d8] sm:$0xff]   ;;  %v6008_v46 = vld [vmem:[%s7630_s2 + $0x560] sm:$0xff]  }
  0x83   :  { %2571 = vmatmul.mubr.bf16.vlgmr.msra.gmra.mrb[12].mxu0 %v229_v47  ;;  %v6009_v47 = vld [vmem:[%s7630_s2 + $0x5e0] sm:$0xff]  }
  0x84   :  { %5603 = vmatpush3.bf16.msra.mxu0 %v5961_v48  ;;  %2611 = vmatmul.mubr.bf16.vlgmr.msra.gmra.mrb[12].mxu1 %v231_v52  ;;  %v6010_v48 = vld [vmem:[%s7630_s2 + $0x520] sm:$0xff]   ;;  %v6014_v52 = vld [vmem:[%s7630_s2 + $0x528] sm:$0xff]  }
  0x85   :  { %5604 = vmatprep.subr.bf16.mxu0 %v5963_v53  ;;  %5625 = vmatpush3.bf16.msra.mxu1 %v5962_v51  ;;  %v6013_v51 = vld [vmem:[%s7630_s2 + $0x5e8] sm:$0xff]  }
  0x86   :  { %5626 = vmatprep.subr.bf16.mxu1 %v5964_v55  ;;  %2650 = vmatprep.mubr.bf16.mxu0 %v234_v27  ;;  %v6015_v53 = vld [vmem:[%s7630_s2 + $0x5a8] sm:$0xff]   ;;  %v6017_v55 = vld [vmem:[%s7630_s2 + $0x5f0] sm:$0xff]   ;;  %v6044_v27 = vld [vmem:[%s7630_s2 + $0x6a0] sm:$0xff]  }
  0x87   :  { %2690 = vmatprep.mubr.bf16.mxu1 %v236_v33  ;;  %v6049_v33 = vld [vmem:[%s7630_s2 + $0x670] sm:$0xff]  }
  0x88   :  { %5605 = vmatpush3.bf16.msra.mxu0 %v5965_v56  ;;  %v6018_v56 = vld [vmem:[%s7630_s2 + $0x530] sm:$0xff]  }
  0x89   :  { %5606 = vmatprep.subr.bf16.mxu0 %v5967_v58  ;;  %5627 = vmatpush3.bf16.msra.mxu1 %v5966_v57  ;;  %v6019_v57 = vld [vmem:[%s7630_s2 + $0x5b0] sm:$0xff]   ;;  %v6020_v58 = vld [vmem:[%s7630_s2 + $0x578] sm:$0xff]  }
  0x8a   :  { %5628 = vmatprep.subr.bf16.mxu1 %v5968_v59  ;;  %v6021_v59 = vld [vmem:[%s7630_s2 + $0x5f8] sm:$0xff]  }
  0x8c   :  { %5607 = vmatpush3.bf16.msra.mxu0 %v5969_v60  ;;  %v6022_v60 = vld [vmem:[%s7630_s2 + $0x538] sm:$0xff]  }
  0x8d   :  { %5608 = vmatprep.subr.bf16.mxu0 %v5971_v62  ;;  %5629 = vmatpush3.bf16.msra.mxu1 %v5970_v61  ;;  %v38_v61 = vld [vmem:[%s7631_s0 + $0x28] sm:$0xff]  ;;  %v6023_v62 = vld [vmem:[%s7630_s2 + $0x5b8] sm:$0xff]  }
  0x8e   :  { %5630 = vmatprep.subr.bf16.mxu1 %v5972_v63  ;;  %v141_v63 = vrot.slane %v38_v61, %v6303_v35 }
  0x90   :  { %5609 = vmatpush3.bf16.msra.mxu0 %v5973_v0  ;;  %v134_v0 = vcombine.high %v38_v61, %v38_v61  ;;  %v6067_v61 = vld [vmem:[%s7630_s2 + $0x7d0] sm:$0xff]  }
  0x91   :  { %5610 = vmatprep.subr.bf16.mxu0 %v5975_v2  ;;  %5631 = vmatpush3.bf16.msra.mxu1 %v5974_v1  ;;  %v6025_v1 = vld [vmem:[%s7630_s2 + $0x640] sm:$0xff]   ;;  %v149_v2 = vcombine.high %v141_v63, %v141_v63 }
  0x92   :  { %5632 = vmatprep.subr.bf16.mxu1 %v5976_v3  ;;  %v148_v3 = vrot.slane %v134_v0, %v6303_v35  ;;  %v6069_v0 = vld [vmem:[%s7630_s2 + $0x790] sm:$0xff]  }
  0x94   :  { %5611 = vmatpush3.bf16.msra.mxu0 %v5977_v4  ;;  %v6026_v4 = vld [vmem:[%s7630_s2 + $0x6c0] sm:$0xff]  }
  0x95   :  { %5612 = vmatprep.subr.bf16.mxu0 %v5979_v6  ;;  %5633 = vmatpush3.bf16.msra.mxu1 %v5978_v5  ;;  %v237_v5 = vpack.c.bf16 %v141_v63, %v141_v63  ;;  %v6027_v6 = vld [vmem:[%s7630_s2 + $0x600] sm:$0xff]   ;;  %v6070_v63 = vld [vmem:[%s7630_s2 + $0x758] sm:$0xff]  }
  0x96   :  { %5634 = vmatprep.subr.bf16.mxu1 %v5980_v7  ;;  %v238_v7 = vpack.c.bf16 %v149_v2, %v149_v2  ;;  %v6072_v2 = vld [vmem:[%s7630_s2 + $0x718] sm:$0xff]  }
  0x98   :  { %5613 = vmatpush3.bf16.msra.mxu0 %v5981_v8  ;;  %v150_v8 = vcombine.high %v148_v3, %v148_v3 }
  0x99   :  { %5614 = vmatprep.subr.bf16.mxu0 %v5983_v10  ;;  %5635 = vmatpush3.bf16.msra.mxu1 %v5982_v9  ;;  %v6028_v9 = vld [vmem:[%s7630_s2 + $0x680] sm:$0xff]   ;;  %v239_v10 = vpack.c.bf16 %v148_v3, %v148_v3 }
  0x9a   :  { %5636 = vmatprep.subr.bf16.mxu1 %v5984_v11  ;;  %v6029_v11 = vld [vmem:[%s7630_s2 + $0x648] sm:$0xff]   ;;  %v6074_v3 = vld [vmem:[%s7630_s2 + $0x760] sm:$0xff]  }
  0x9c   :  { %5615 = vmatpush3.bf16.msra.mxu0 %v5985_v12  ;;  %v240_v12 = vpack.c.bf16 %v150_v8, %v150_v8  ;;  %v6077_v8 = vld [vmem:[%s7630_s2 + $0x7a0] sm:$0xff]  }
  0x9d   :  { %5616 = vmatprep.subr.bf16.mxu0 %v5987_v14  ;;  %5637 = vmatpush3.bf16.msra.mxu1 %v5986_v13  ;;  %v6030_v13 = vld [vmem:[%s7630_s2 + $0x6c8] sm:$0xff]  }
  0x9e   :  { %5638 = vmatprep.subr.bf16.mxu1 %v5988_v15  ;;  %v6031_v14 = vld [vmem:[%s7630_s2 + $0x608] sm:$0xff]  }
  0x9f   :  { %v6032_v15 = vld [vmem:[%s7630_s2 + $0x688] sm:$0xff]  }
  0xa0   :  { %5617 = vmatpush3.bf16.msra.mxu0 %v5989_v16  ;;  %v6033_v16 = vld [vmem:[%s7630_s2 + $0x650] sm:$0xff]  }
  0xa1   :  { %5646 = vmatprep.subr.bf16.mxu0 %v5992_v21  ;;  %5639 = vmatpush3.bf16.msra.mxu1 %v5990_v18  ;;  %v6035_v18 = vld [vmem:[%s7630_s2 + $0x610] sm:$0xff]   ;;  %v6038_v21 = vld [vmem:[%s7630_s2 + $0x6d8] sm:$0xff]  }
  0xa2   :  { %5668 = vmatprep.subr.bf16.mxu1 %v5993_v24  ;;  %v6041_v24 = vld [vmem:[%s7630_s2 + $0x660] sm:$0xff]  }
  0xa3   :  { %2651 = vmatmul.mubr.bf16.vlgmr.msra.gmra.mrb[16].mxu0 %v233_v25  ;;  %v6042_v25 = vld [vmem:[%s7630_s2 + $0x6e0] sm:$0xff]  }
  0xa4   :  { %5647 = vmatpush3.bf16.msra.mxu0 %v5994_v26  ;;  %2691 = vmatmul.mubr.bf16.vlgmr.msra.gmra.mrb[16].mxu1 %v235_v31  ;;  %v6043_v26 = vld [vmem:[%s7630_s2 + $0x620] sm:$0xff]   ;;  %v6047_v31 = vld [vmem:[%s7630_s2 + $0x628] sm:$0xff]  }
  0xa5   :  { %5648 = vmatprep.subr.bf16.mxu0 %v5996_v32  ;;  %5669 = vmatpush3.bf16.msra.mxu1 %v5995_v29  ;;  %v6046_v29 = vld [vmem:[%s7630_s2 + $0x6e8] sm:$0xff]  }
  0xa6   :  { %5670 = vmatprep.subr.bf16.mxu1 %v5997_v34  ;;  %2730 = vmatprep.mubr.bf16.mxu0 %v238_v7  ;;  %v6048_v32 = vld [vmem:[%s7630_s2 + $0x6a8] sm:$0xff]   ;;  %v6050_v34 = vld [vmem:[%s7630_s2 + $0x6f0] sm:$0xff]  }
  0xa7   :  { %2770 = vmatprep.mubr.bf16.mxu1 %v240_v12  ;;  %v6078_v7 = vld [vmem:[%s7630_s2 + $0x768] sm:$0xff]  }
  0xa8   :  { %5649 = vmatpush3.bf16.msra.mxu0 %v5998_v36  ;;  %v6051_v36 = vld [vmem:[%s7630_s2 + $0x630] sm:$0xff]   ;;  %v6080_v12 = vld [vmem:[%s7630_s2 + $0x728] sm:$0xff]  }
  0xa9   :  { %5650 = vmatprep.subr.bf16.mxu0 %v6000_v38  ;;  %5671 = vmatpush3.bf16.msra.mxu1 %v5999_v37  ;;  %v6052_v37 = vld [vmem:[%s7630_s2 + $0x6b0] sm:$0xff]   ;;  %v6053_v38 = vld [vmem:[%s7630_s2 + $0x678] sm:$0xff]  }
  0xaa   :  { %5672 = vmatprep.subr.bf16.mxu1 %v6001_v39  ;;  %v6054_v39 = vld [vmem:[%s7630_s2 + $0x6f8] sm:$0xff]  }
  0xac   :  { %5651 = vmatpush3.bf16.msra.mxu0 %v6002_v40  ;;  %v6055_v40 = vld [vmem:[%s7630_s2 + $0x638] sm:$0xff]  }
  0xad   :  { %5652 = vmatprep.subr.bf16.mxu0 %v6004_v42  ;;  %5673 = vmatpush3.bf16.msra.mxu1 %v6003_v41  ;;  %v39_v41 = vld [vmem:[%s7631_s0 + $0x30] sm:$0xff] }
  0xae   :  { %5674 = vmatprep.subr.bf16.mxu1 %v6005_v43  ;;  %v158_v42 = vrot.slane %v39_v41, %v6303_v35  ;;  %v151_v43 = vcombine.high %v39_v41, %v39_v41 }
  0xb0   :  { %5653 = vmatpush3.bf16.msra.mxu0 %v6006_v44  ;;  %v6058_v44 = vld [vmem:[%s7630_s2 + $0x740] sm:$0xff]  }
  0xb1   :  { %5654 = vmatprep.subr.bf16.mxu0 %v6008_v46  ;;  %5675 = vmatpush3.bf16.msra.mxu1 %v6007_v45  ;;  %v6056_v45 = vld [vmem:[%s7630_s2 + $0x6b8] sm:$0xff]   ;;  %v166_v46 = vcombine.high %v158_v42, %v158_v42 }
  0xb2   :  { %5676 = vmatprep.subr.bf16.mxu1 %v6009_v47  ;;  %v165_v47 = vrot.slane %v151_v43, %v6303_v35 }
  0xb4   :  { %5655 = vmatpush3.bf16.msra.mxu0 %v6010_v48  ;;  %v6059_v48 = vld [vmem:[%s7630_s2 + $0x7c0] sm:$0xff]  }
  0xb5   :  { %5656 = vmatprep.subr.bf16.mxu0 %v6012_v50  ;;  %5677 = vmatpush3.bf16.msra.mxu1 %v6011_v49  ;;  %v241_v49 = vpack.c.bf16 %v158_v42, %v158_v42  ;;  %v242_v50 = vpack.c.bf16 %v166_v46, %v166_v46 }
  0xb6   :  { %5678 = vmatprep.subr.bf16.mxu1 %v6013_v51  ;;  %v167_v51 = vcombine.high %v165_v47, %v165_v47 }
  0xb8   :  { %5657 = vmatpush3.bf16.msra.mxu0 %v6014_v52  ;;  %v6060_v52 = vld [vmem:[%s7630_s2 + $0x700] sm:$0xff]  }
  0xb9   :  { %5658 = vmatprep.subr.bf16.mxu0 %v6016_v54  ;;  %5679 = vmatpush3.bf16.msra.mxu1 %v6015_v53  ;;  %v243_v53 = vpack.c.bf16 %v165_v47, %v165_v47  ;;  %v6062_v54 = vld [vmem:[%s7630_s2 + $0x748] sm:$0xff]  }
  0xba   :  { %5680 = vmatprep.subr.bf16.mxu1 %v6017_v55  ;;  %v244_v55 = vpack.c.bf16 %v167_v51, %v167_v51 }
  0xbc   :  { %5659 = vmatpush3.bf16.msra.mxu0 %v6018_v56  ;;  %v6061_v56 = vld [vmem:[%s7630_s2 + $0x780] sm:$0xff]  }
  0xbd   :  { %5660 = vmatprep.subr.bf16.mxu0 %v6020_v58  ;;  %5681 = vmatpush3.bf16.msra.mxu1 %v6019_v57  ;;  %v6063_v57 = vld [vmem:[%s7630_s2 + $0x7c8] sm:$0xff]  }
  0xbe   :  { %5682 = vmatprep.subr.bf16.mxu1 %v6021_v59  ;;  %v6064_v58 = vld [vmem:[%s7630_s2 + $0x708] sm:$0xff]   ;;  %v6066_v59 = vld [vmem:[%s7630_s2 + $0x750] sm:$0xff]  }
  0xc0   :  { %5661 = vmatpush3.bf16.msra.mxu0 %v6022_v60  ;;  %v6065_v60 = vld [vmem:[%s7630_s2 + $0x788] sm:$0xff]  }
  0xc1   :  { %5690 = vmatprep.subr.bf16.mxu0 %v6025_v1  ;;  %5683 = vmatpush3.bf16.msra.mxu1 %v6023_v62  ;;  %v6068_v62 = vld [vmem:[%s7630_s2 + $0x710] sm:$0xff]   ;;  %v6071_v1 = vld [vmem:[%s7630_s2 + $0x7d8] sm:$0xff]  }
  0xc2   :  { %5712 = vmatprep.subr.bf16.mxu1 %v6026_v4  ;;  %v6073_v4 = vld [vmem:[%s7630_s2 + $0x798] sm:$0xff]  }
  0xc3   :  { %2731 = vmatmul.mubr.bf16.vlgmr.msra.gmra.mrb[20].mxu0 %v237_v5  ;;  %v6075_v5 = vld [vmem:[%s7630_s2 + $0x7e0] sm:$0xff]  }
  0xc4   :  { %5691 = vmatpush3.bf16.msra.mxu0 %v6027_v6  ;;  %2771 = vmatmul.mubr.bf16.vlgmr.msra.gmra.mrb[20].mxu1 %v239_v10  ;;  %v6076_v6 = vld [vmem:[%s7630_s2 + $0x720] sm:$0xff]   ;;  %v6079_v10 = vld [vmem:[%s7630_s2 + $0x7e8] sm:$0xff]  }
  0xc5   :  { %5692 = vmatprep.subr.bf16.mxu0 %v6029_v11  ;;  %5713 = vmatpush3.bf16.msra.mxu1 %v6028_v9  ;;  %v761_v9 = vld [vmem:[%s7632_s1] sm:$0x3] }
  0xc6   :  { %5714 = vmatprep.subr.bf16.mxu1 %v6030_v13  ;;  %2810 = vmatprep.mubr.bf16.mxu0 %v242_v50 }
  0xc7   :  { %2850 = vmatprep.mubr.bf16.mxu1 %v244_v55 }
  0xc8   :  { %5693 = vmatpush3.bf16.msra.mxu0 %v6031_v14  ;;  %v6082_v14 = vld [vmem:[%s7630_s2 + $0x770] sm:$0xff]  }
  0xc9   :  { %5694 = vmatprep.subr.bf16.mxu0 %v6033_v16  ;;  %5715 = vmatpush3.bf16.msra.mxu1 %v6032_v15 }
  0xca   :  { %5716 = vmatprep.subr.bf16.mxu1 %v6034_v17 }
  0xcc   :  { %5695 = vmatpush3.bf16.msra.mxu0 %v6035_v18  ;;  %v6081_v18 = vld [vmem:[%s7630_s2 + $0x7a8] sm:$0xff]  }
  0xcd   :  { %5696 = vmatprep.subr.bf16.mxu0 %v6037_v20  ;;  %5717 = vmatpush3.bf16.msra.mxu1 %v6036_v19  ;;  %v6083_v19 = vld [vmem:[%s7630_s2 + $0x7f0] sm:$0xff]  }
  0xce   :  { %5718 = vmatprep.subr.bf16.mxu1 %v6038_v21 }
  0xd0   :  { %5697 = vmatpush3.bf16.msra.mxu0 %v6039_v22 }
  0xd1   :  { %5698 = vmatprep.subr.bf16.mxu0 %v6041_v24  ;;  %5719 = vmatpush3.bf16.msra.mxu1 %v6040_v23 }
  0xd2   :  { %5720 = vmatprep.subr.bf16.mxu1 %v6042_v25  ;;  %v6084_v25 = vld [vmem:[%s7630_s2 + $0x730] sm:$0xff]  }
  0xd4   :  { %5699 = vmatpush3.bf16.msra.mxu0 %v6043_v26 }
  0xd5   :  { %5700 = vmatprep.subr.bf16.mxu0 %v6045_v28  ;;  %5721 = vmatpush3.bf16.msra.mxu1 %v6044_v27  ;;  %v6086_v27 = vld [vmem:[%s7630_s2 + $0x778] sm:$0xff]  }
  0xd6   :  { %5722 = vmatprep.subr.bf16.mxu1 %v6046_v29  ;;  %v6085_v29 = vld [vmem:[%s7630_s2 + $0x7b0] sm:$0xff]  }
  0xd8   :  { %5701 = vmatpush3.bf16.msra.mxu0 %v6047_v31  ;;  %v6087_v31 = vld [vmem:[%s7630_s2 + $0x7f8] sm:$0xff]  }
  0xd9   :  { %5702 = vmatprep.subr.bf16.mxu0 %v6049_v33  ;;  %5723 = vmatpush3.bf16.msra.mxu1 %v6048_v32  ;;  %v6088_v32 = vld [vmem:[%s7630_s2 + $0x738] sm:$0xff]  }
  0xda   :  { %5724 = vmatprep.subr.bf16.mxu1 %v6050_v34  ;;  %v40_v33 = vld [vmem:[%s7631_s0 + $0x38] sm:$0xff] }
  0xdb   :  { %v175_v34 = vrot.slane %v40_v33, %v6303_v35 }
  0xdc   :  { %5703 = vmatpush3.bf16.msra.mxu0 %v6051_v36  ;;  %v168_v36 = vcombine.high %v40_v33, %v40_v33 }
  0xdd   :  { %5704 = vmatprep.subr.bf16.mxu0 %v6053_v38  ;;  %5725 = vmatpush3.bf16.msra.mxu1 %v6052_v37  ;;  %v6089_v37 = vld [vmem:[%s7630_s2 + $0x7b8] sm:$0xff]   ;;  %v183_v38 = vcombine.high %v175_v34, %v175_v34 }
  0xde   :  { %5726 = vmatprep.subr.bf16.mxu1 %v6054_v39  ;;  %v182_v39 = vrot.slane %v168_v36, %v6303_v35 }
  0xdf   :  { %v246_v41 = vpack.c.bf16 %v183_v38, %v183_v38 }
  0xe0   :  { %5705 = vmatpush3.bf16.msra.mxu0 %v6055_v40  ;;  %v245_v40 = vpack.c.bf16 %v175_v34, %v175_v34  ;;  %v184_v42 = vcombine.high %v182_v39, %v182_v39  ;;  %v247_v43 = vpack.c.bf16 %v182_v39, %v182_v39 }
  0xe1   :  { %5734 = vmatprep.subr.bf16.mxu0 %v6058_v44  ;;  %5727 = vmatpush3.bf16.msra.mxu1 %v6056_v45 }
  0xe2   :  { %5756 = vmatprep.subr.bf16.mxu1 %v6059_v48  ;;  %v248_v44 = vpack.c.bf16 %v184_v42, %v184_v42 }
  0xe3   :  { %2811 = vmatmul.mubr.bf16.vlgmr.msra.gmra.mrb[24].mxu0 %v241_v49 }
  0xe4   :  { %5735 = vmatpush3.bf16.msra.mxu0 %v6060_v52  ;;  %2851 = vmatmul.mubr.bf16.vlgmr.msra.gmra.mrb[24].mxu1 %v243_v53 }
  0xe5   :  { %5736 = vmatprep.subr.bf16.mxu0 %v6062_v54  ;;  %5757 = vmatpush3.bf16.msra.mxu1 %v6061_v56 }
  0xe6   :  { %5758 = vmatprep.subr.bf16.mxu1 %v6063_v57  ;;  %2890 = vmatprep.mubr.bf16.mxu0 %v246_v41 }
  0xe7   :  { %2930 = vmatprep.mubr.bf16.mxu1 %v248_v44 }
  0xe8   :  { %5737 = vmatpush3.bf16.msra.mxu0 %v6064_v58 }
  0xe9   :  { %5738 = vmatprep.subr.bf16.mxu0 %v6066_v59  ;;  %5759 = vmatpush3.bf16.msra.mxu1 %v6065_v60 }
  0xea   :  { %5760 = vmatprep.subr.bf16.mxu1 %v6067_v61 }
  0xec   :  { %5739 = vmatpush3.bf16.msra.mxu0 %v6068_v62 }
  0xed   :  { %5740 = vmatprep.subr.bf16.mxu0 %v6070_v63  ;;  %5761 = vmatpush3.bf16.msra.mxu1 %v6069_v0 }
  0xee   :  { %5762 = vmatprep.subr.bf16.mxu1 %v6071_v1 }
  0xf0   :  { %5741 = vmatpush3.bf16.msra.mxu0 %v6072_v2 }
  0xf1   :  { %5742 = vmatprep.subr.bf16.mxu0 %v6074_v3  ;;  %5763 = vmatpush3.bf16.msra.mxu1 %v6073_v4 }
  0xf2   :  { %5764 = vmatprep.subr.bf16.mxu1 %v6075_v5  ;;  %v6156_v5 = vmov 0.0|0.0  }
  0xf4   :  { %5743 = vmatpush3.bf16.msra.mxu0 %v6076_v6 }
  0xf5   :  { %5744 = vmatprep.subr.bf16.mxu0 %v6078_v7  ;;  %5765 = vmatpush3.bf16.msra.mxu1 %v6077_v8 }
  0xf6   :  { %v5442_v11 = vpop.f32.mrb[0].mxu0  ;;  %5766 = vmatprep.subr.bf16.mxu1 %v6079_v10 }
  0xf7   :  { %v5443_v13 = vpop.f32.mrb[1].mxu0  ;;  %v5464_v15 = vpop.f32.mrb[0].mxu1 }
  0xf8   :  { %v5444_v16 = vadd.f32 %v5443_v13, %v5442_v11  ;;  %v5445_v17 = vpop.f32.mrb[2].mxu0  ;;  %v5465_v20 = vpop.f32.mrb[1].mxu1  ;;  %5745 = vmatpush3.bf16.msra.mxu0 %v6080_v12  ;;  %v2938_v11 = vld [vmem:[%s7633_s3] sm:$0xff]  ;;  %v2939_v12 = vld [vmem:[%s7633_s3 + $0x8] sm:$0xff] }
  0xf9   :  { %v5446_v21 = vpop.f32.mrb[3].mxu0  ;;  %v5466_v23 = vadd.f32 %v5465_v20, %v5464_v15  ;;  %v5467_v24 = vpop.f32.mrb[2].mxu1  ;;  %5746 = vmatprep.subr.bf16.mxu0 %v6082_v14  ;;  %5767 = vmatpush3.bf16.msra.mxu1 %v6081_v18  ;;  %v5811_v15 = vpack.c.bf16 %v2939_v12, %v2938_v11 }
  0xfa   :  { %v2333_v22 = vadd.f32 %v5444_v16, %v761_v9  ;;  %v5468_v26 = vpop.f32.mrb[3].mxu1  ;;  %5768 = vmatprep.subr.bf16.mxu1 %v6083_v19  ;;  %v2940_v21 = vld [vmem:[%s7633_s3 + $0x10] sm:$0xff]  ;;  %v6158_v24 = vmov 0.0  }
  0xfb   :  { %v3025_v26 = vld [vmem:[%s7634_s5 + $0x8] sm:$0xff] }
  0xfc   :  { %v2373_v28 = vadd.f32 %v5466_v23, %v2333_v22  ;;  %5747 = vmatpush3.bf16.msra.mxu0 %v6084_v25  ;;  %v2941_v22 = vld [vmem:[%s7633_s3 + $0x18] sm:$0xff]  ;;  %v3024_v25 = vld [vmem:[%s7634_s5] sm:$0xff] }
  0xfd   :  { %5748 = vmatprep.subr.bf16.mxu0 %v6086_v27  ;;  %5769 = vmatpush3.bf16.msra.mxu1 %v6085_v29  ;;  %v5814_v23 = vpack.c.bf16 %v2941_v22, %v2940_v21  ;;  %v5817_v27 = vpack.c.bf16 %v3025_v26, %v3024_v25  ;;  %v3127_v22 = vld [vmem:[%s7635_s7 + $0x88] sm:$0xff] }
  0xfe   :  { %5770 = vmatprep.subr.bf16.mxu1 %v6087_v31 }
 0x100   :  { %5749 = vmatpush3.bf16.msra.mxu0 %v6088_v32 }
 0x101   :  { %5771 = vmatpush3.bf16.msra.mxu1 %v6089_v37  ;;  %5810 = vmatprep.subr.bf16.mxu0 %v6156_v5 }
 0x102   :  { %5816 = vmatprep.subr.bf16.mxu1 %v6156_v5 }
 0x103   :  { %2891 = vmatmul.mubr.bf16.vlgmr.msra.gmra.mrb[28].mxu0 %v245_v40 }
 0x104   :  { %2931 = vmatmul.mubr.bf16.vlgmr.msra.gmra.mrb[28].mxu1 %v247_v43  ;;  %5812 = vmatpush3.bf16.msra.mxu0 %v5811_v15  ;;  %v3027_v15 = vld [vmem:[%s7634_s5 + $0x18] sm:$0xff] }
 0x105   :  { %5813 = vmatprep.subr.bf16.mxu0 %v6156_v5  ;;  %5796 = vmatprep.mubr.msk.f32.mxu0 %vm6157_vm0, %v6158_v24 }
 0x106   :  { %5807 = vmatprep.mubr.msk.f32.mxu1 %vm6157_vm0, %v6158_v24  ;;  %5818 = vmatpush3.bf16.msra.mxu1 %v5817_v27  ;;  %v3158_v24 = vld [vmem:[%s7635_s7 + $0x180] sm:$0xff] }
 0x107   :  { %5819 = vmatprep.subr.bf16.mxu1 %v6156_v5 }
 0x108   :  { %5815 = vmatpush3.bf16.msra.mxu0 %v5814_v23  ;;  %v3142_v23 = vld [vmem:[%s7635_s7 + $0x100] sm:$0xff] }
 0x109   :  { %v5315_v27 = vcombine.high %v3142_v23, %v3158_v24 }
 0x116   :  { %v5486_v45 = vpop.f32.mrb[4].mxu0 }
 0x117   :  { %v5487_v46 = vpop.f32.mrb[5].mxu0  ;;  %v5508_v47 = vpop.f32.mrb[4].mxu1 }
 0x118   :  { %v5488_v48 = vadd.f32 %v5487_v46, %v5486_v45  ;;  %v5489_v49 = vpop.f32.mrb[6].mxu0  ;;  %v5509_v50 = vpop.f32.mrb[5].mxu1 }
 0x119   :  { %v5490_v51 = vpop.f32.mrb[7].mxu0  ;;  %v5510_v53 = vadd.f32 %v5509_v50, %v5508_v47  ;;  %v5511_v54 = vpop.f32.mrb[6].mxu1 }
 0x11a   :  { %v2413_v52 = vadd.f32 %v5488_v48, %v2373_v28  ;;  %v5512_v55 = vpop.f32.mrb[7].mxu1 }
 0x11c   :  { %v2453_v56 = vadd.f32 %v5510_v53, %v2413_v52 }
 0x136   :  { %v5530_v57 = vpop.f32.mrb[8].mxu0 }
 0x137   :  { %v5531_v58 = vpop.f32.mrb[9].mxu0  ;;  %v5552_v59 = vpop.f32.mrb[8].mxu1 }
 0x138   :  { %v5532_v60 = vadd.f32 %v5531_v58, %v5530_v57  ;;  %v5533_v61 = vpop.f32.mrb[10].mxu0  ;;  %v5553_v62 = vpop.f32.mrb[9].mxu1 }
 0x139   :  { %v5534_v63 = vpop.f32.mrb[11].mxu0  ;;  %v5554_v1 = vadd.f32 %v5553_v62, %v5552_v59  ;;  %v5555_v2 = vpop.f32.mrb[10].mxu1 }
 0x13a   :  { %v2493_v0 = vadd.f32 %v5532_v60, %v2453_v56  ;;  %v5556_v3 = vpop.f32.mrb[11].mxu1 }
 0x13c   :  { %v2533_v4 = vadd.f32 %v5554_v1, %v2493_v0 }
 0x156   :  { %v5574_v6 = vpop.f32.mrb[12].mxu0 }
 0x157   :  { %v5575_v7 = vpop.f32.mrb[13].mxu0  ;;  %v5596_v8 = vpop.f32.mrb[12].mxu1 }
 0x158   :  { %v5576_v9 = vadd.f32 %v5575_v7, %v5574_v6  ;;  %v5577_v10 = vpop.f32.mrb[14].mxu0  ;;  %v5597_v13 = vpop.f32.mrb[13].mxu1 }
 0x159   :  { %v5578_v14 = vpop.f32.mrb[15].mxu0  ;;  %v5598_v17 = vadd.f32 %v5597_v13, %v5596_v8  ;;  %v5599_v18 = vpop.f32.mrb[14].mxu1 }
 0x15a   :  { %v2573_v16 = vadd.f32 %v5576_v9, %v2533_v4  ;;  %v5600_v19 = vpop.f32.mrb[15].mxu1  ;;  %v3026_v14 = vld [vmem:[%s7634_s5 + $0x10] sm:$0xff]  ;;  %v3126_v18 = vld [vmem:[%s7635_s7 + $0x80] sm:$0xff] }
 0x15b   :  { %v3111_v19 = vld [vmem:[%s7635_s7 + $0x8] sm:$0xff] }
 0x15c   :  { %v2613_v20 = vadd.f32 %v5598_v17, %v2573_v16  ;;  %v5820_v16 = vpack.c.bf16 %v3027_v15, %v3026_v14  ;;  %v3110_v17 = vld [vmem:[%s7635_s7] sm:$0xff]  ;;  %v5284_v25 = vcombine.low %v3111_v19, %v3127_v22  ;;  %v5285_v26 = vcombine.high %v3111_v19, %v3127_v22  ;;  %v3192_v14 = vld [vmem:[%s7635_s7 + $0x290] sm:$0xff]  ;;  %v3177_v15 = vld [vmem:[%s7635_s7 + $0x218] sm:$0xff] }
 0x15d   :  { %v5283_v21 = vcombine.high %v3110_v17, %v3126_v18  ;;  %v3224_v22 = vld [vmem:[%s7635_s7 + $0x390] sm:$0xff] }
 0x15e   :  { %5821 = vmatpush3.bf16.msra.mxu1 %v5820_v16  ;;  %v3193_v16 = vld [vmem:[%s7635_s7 + $0x298] sm:$0xff] }
 0x15f   :  { %4050 = vmatprep.subr.bf16.mxu0 %v5283_v21  ;;  %4091 = vmatprep.subr.bf16.mxu1 %v5285_v26  ;;  %v3208_v21 = vld [vmem:[%s7635_s7 + $0x310] sm:$0xff]  ;;  %v5352_v26 = vcombine.low %v3177_v15, %v3193_v16 }
 0x176   :  { %v5618_v28 = vpop.f32.mrb[16].mxu0 }
 0x177   :  { %v5619_v29 = vpop.f32.mrb[17].mxu0  ;;  %v5640_v31 = vpop.f32.mrb[16].mxu1 }
 0x178   :  { %v5620_v32 = vadd.f32 %v5619_v29, %v5618_v28  ;;  %v5621_v33 = vpop.f32.mrb[18].mxu0  ;;  %v5641_v34 = vpop.f32.mrb[17].mxu1  ;;  %v5314_v28 = vcombine.low %v3142_v23, %v3158_v24  ;;  %v3174_v29 = vld [vmem:[%s7635_s7 + $0x200] sm:$0xff]  ;;  %v3209_v23 = vld [vmem:[%s7635_s7 + $0x318] sm:$0xff] }
 0x179   :  { %v5622_v36 = vpop.f32.mrb[19].mxu0  ;;  %v5642_v38 = vadd.f32 %v5641_v34, %v5640_v31  ;;  %v5643_v39 = vpop.f32.mrb[18].mxu1  ;;  %v3190_v31 = vld [vmem:[%s7635_s7 + $0x280] sm:$0xff]  ;;  %v3225_v24 = vld [vmem:[%s7635_s7 + $0x398] sm:$0xff] }
 0x17a   :  { %v2653_v37 = vadd.f32 %v5620_v32, %v2613_v20  ;;  %v5644_v40 = vpop.f32.mrb[19].mxu1  ;;  %v5282_v20 = vcombine.low %v3110_v17, %v3126_v18  ;;  %v5347_v32 = vcombine.high %v3174_v29, %v3190_v31  ;;  %v5346_v33 = vcombine.low %v3174_v29, %v3190_v31  ;;  %v5278_v34 = vld [vmem:[%s7636_s4] ss:$0 sm:$0xff] }
 0x17b   :  { %v3114_v29 = vld [vmem:[%s7635_s7 + $0x20] sm:$0xff] }
 0x17c   :  { %v2693_v41 = vadd.f32 %v5642_v38, %v2653_v37  ;;  %v3143_v37 = vld [vmem:[%s7635_s7 + $0x108] sm:$0xff]  ;;  %v3130_v31 = vld [vmem:[%s7635_s7 + $0xa0] sm:$0xff] }
 0x17d   :  { %v3159_v38 = vld [vmem:[%s7635_s7 + $0x188] sm:$0xff] }
 0x196   :  { %v5662_v42 = vpop.f32.mrb[20].mxu0 }
 0x197   :  { %v5663_v43 = vpop.f32.mrb[21].mxu0  ;;  %v5684_v44 = vpop.f32.mrb[20].mxu1 }
 0x198   :  { %v5664_v45 = vadd.f32 %v5663_v43, %v5662_v42  ;;  %v5665_v46 = vpop.f32.mrb[22].mxu0  ;;  %v5685_v47 = vpop.f32.mrb[21].mxu1  ;;  %v5317_v42 = vcombine.high %v3143_v37, %v3159_v38  ;;  %v3175_v43 = vld [vmem:[%s7635_s7 + $0x208] sm:$0xff] }
 0x199   :  { %v5666_v48 = vpop.f32.mrb[23].mxu0  ;;  %v5686_v50 = vadd.f32 %v5685_v47, %v5684_v44  ;;  %v5687_v51 = vpop.f32.mrb[22].mxu1  ;;  %v3191_v44 = vld [vmem:[%s7635_s7 + $0x288] sm:$0xff] }
 0x19a   :  { %v2733_v49 = vadd.f32 %v5664_v45, %v2693_v41  ;;  %v5688_v52 = vpop.f32.mrb[23].mxu1  ;;  %v5316_v45 = vcombine.low %v3143_v37, %v3159_v38  ;;  %v5349_v46 = vcombine.high %v3175_v43, %v3191_v44  ;;  %v5348_v47 = vcombine.low %v3175_v43, %v3191_v44  ;;  %v3206_v48 = vld [vmem:[%s7635_s7 + $0x300] sm:$0xff] }
 0x19b   :  { %v3223_v52 = vld [vmem:[%s7635_s7 + $0x388] sm:$0xff]  ;;  %v5291_v37 = vcombine.high %v3114_v29, %v3130_v31  ;;  %v5290_v43 = vcombine.low %v3114_v29, %v3130_v31 }
 0x19c   :  { %v2773_v53 = vadd.f32 %v5686_v50, %v2733_v49  ;;  %v3222_v49 = vld [vmem:[%s7635_s7 + $0x380] sm:$0xff]  ;;  %v3207_v50 = vld [vmem:[%s7635_s7 + $0x308] sm:$0xff] }
 0x19d   :  { %v5379_v51 = vcombine.high %v3206_v48, %v3222_v49 }
 0x1b6   :  { %v5706_v54 = vpop.f32.mrb[24].mxu0 }
 0x1b7   :  { %v5707_v55 = vpop.f32.mrb[25].mxu0  ;;  %v5728_v56 = vpop.f32.mrb[24].mxu1 }
 0x1b8   :  { %v5708_v57 = vadd.f32 %v5707_v55, %v5706_v54  ;;  %v5709_v58 = vpop.f32.mrb[26].mxu0  ;;  %v5729_v59 = vpop.f32.mrb[25].mxu1  ;;  %v5380_v54 = vcombine.low %v3207_v50, %v3223_v52  ;;  %v5381_v55 = vcombine.high %v3207_v50, %v3223_v52  ;;  %v3195_v50 = vld [vmem:[%s7635_s7 + $0x2a8] sm:$0xff] }
 0x1b9   :  { %v5710_v60 = vpop.f32.mrb[27].mxu0  ;;  %v5730_v62 = vadd.f32 %v5729_v59, %v5728_v56  ;;  %v5731_v63 = vpop.f32.mrb[26].mxu1  ;;  %v3112_v56 = vld [vmem:[%s7635_s7 + $0x10] sm:$0xff]  ;;  %v3113_v58 = vld [vmem:[%s7635_s7 + $0x18] sm:$0xff]  ;;  %v6159_v59 = vmov 0  }
 0x1ba   :  { %v2813_v61 = vadd.f32 %v5708_v57, %v2773_v53  ;;  %v5732_v0 = vpop.f32.mrb[27].mxu1  ;;  %v5378_v53 = vcombine.low %v3206_v48, %v3222_v49  ;;  %v3128_v57 = vld [vmem:[%s7635_s7 + $0x90] sm:$0xff]  ;;  %v3194_v48 = vld [vmem:[%s7635_s7 + $0x2a0] sm:$0xff]  ;;  %v3179_v49 = vld [vmem:[%s7635_s7 + $0x228] sm:$0xff] }
 0x1bb   :  { %v5286_v60 = vcombine.low %v3112_v56, %v3128_v57 }
 0x1bc   :  { %v2853_v1 = vadd.f32 %v5730_v62, %v2813_v61  ;;  %v5287_v61 = vcombine.high %v3112_v56, %v3128_v57  ;;  %v3129_v62 = vld [vmem:[%s7635_s7 + $0x98] sm:$0xff]  ;;  %v3226_v56 = vld [vmem:[%s7635_s7 + $0x3a0] sm:$0xff]  ;;  %v3211_v57 = vld [vmem:[%s7635_s7 + $0x328] sm:$0xff] }
 0x1bd   :  { %v5288_v63 = vcombine.low %v3113_v58, %v3129_v62  ;;  %v5289_v0 = vcombine.high %v3113_v58, %v3129_v62  ;;  %v3227_v58 = vld [vmem:[%s7635_s7 + $0x3a8] sm:$0xff] }
 0x1d6   :  { %v5750_v2 = vpop.f32.mrb[28].mxu0 }
 0x1d7   :  { %v5751_v3 = vpop.f32.mrb[29].mxu0  ;;  %v5772_v4 = vpop.f32.mrb[28].mxu1 }
 0x1d8   :  { %v5752_v5 = vadd.f32 %v5751_v3, %v5750_v2  ;;  %v5753_v6 = vpop.f32.mrb[30].mxu0  ;;  %v5773_v7 = vpop.f32.mrb[29].mxu1 }
 0x1d9   :  { %v5754_v8 = vpop.f32.mrb[31].mxu0  ;;  %v5774_v10 = vadd.f32 %v5773_v7, %v5772_v4  ;;  %v5775_v11 = vpop.f32.mrb[30].mxu1  ;;  %v3160_v6 = vld [vmem:[%s7635_s7 + $0x190] sm:$0xff]  ;;  %v3145_v7 = vld [vmem:[%s7635_s7 + $0x118] sm:$0xff] }
 0x1da   :  { %v2893_v9 = vadd.f32 %v5752_v5, %v2853_v1  ;;  %v5776_v12 = vpop.f32.mrb[31].mxu1  ;;  %v5280_v1 = vld [vmem:[%s7637_s6] ss:$0 sm:$0xff]  ;;  %v3144_v5 = vld [vmem:[%s7635_s7 + $0x110] sm:$0xff]  ;;  %v3161_v8 = vld [vmem:[%s7635_s7 + $0x198] sm:$0xff] }
 0x1db   :  { %v5319_v11 = vcombine.high %v3144_v5, %v3160_v6  ;;  %v5321_v12 = vcombine.high %v3145_v7, %v3161_v8  ;;  %v5318_v17 = vcombine.low %v3144_v5, %v3160_v6  ;;  %v5320_v18 = vcombine.low %v3145_v7, %v3161_v8  ;;  %v3148_v8 = vld [vmem:[%s7635_s7 + $0x130] sm:$0xff] }
 0x1dc   :  { %v2933_v13 = vadd.f32 %v5774_v10, %v2893_v9  ;;  %v5388_v5 = vcombine.low %v3211_v57, %v3227_v58 }
 0x1de   :  { %5797 = vmatmul.mubr.msk.f32.vlgmr.msra.gmra.mrb[32].mxu0 %vm2949_vm1, %v2933_v13  ;;  %v3176_v13 = vld [vmem:[%s7635_s7 + $0x210] sm:$0xff] }
 0x1df   :  { %4051 = vmatpush1.bf16.msra.mxu0 %v5282_v20  ;;  %4082 = vmatprep.mubr.bf16.mxu0 %v6159_v59  ;;  %v5351_v19 = vcombine.high %v3176_v13, %v3192_v14  ;;  %v5353_v20 = vcombine.high %v3177_v15, %v3193_v16 }
 0x1e0   :  { %4052 = vmatprep.subr.bf16.mxu0 %v5315_v27  ;;  %v5383_v27 = vcombine.high %v3208_v21, %v3224_v22 }
 0x1e3   :  { %4053 = vmatpush1.bf16.msra.mxu0 %v5314_v28  ;;  %v5385_v28 = vcombine.high %v3209_v23, %v3225_v24 }
 0x1e4   :  { %4054 = vmatprep.subr.bf16.mxu0 %v5347_v32  ;;  %v3115_v32 = vld [vmem:[%s7635_s7 + $0x28] sm:$0xff] }
 0x1e7   :  { %4055 = vmatpush1.bf16.msra.mxu0 %v5346_v33  ;;  %v3131_v33 = vld [vmem:[%s7635_s7 + $0xa8] sm:$0xff] }
 0x1e8   :  { %4056 = vmatprep.subr.bf16.mxu0 %v5379_v51  ;;  %v5293_v38 = vcombine.high %v3115_v32, %v3131_v33  ;;  %v5292_v44 = vcombine.low %v3115_v32, %v3131_v33 }
 0x1eb   :  { %4057 = vmatpush1.bf16.msra.mxu0 %v5378_v53 }
 0x1ec   :  { %4132 = vmatprep.subr.bf16.mxu0 %v5287_v61  ;;  %v5356_v61 = vcombine.low %v3179_v49, %v3195_v50 }
 0x2b1   :  { %v3019_v36 = vpop.f32.mrb[32].mxu0 }
 0x2b2   :  { %v3020_v39 = vadd.f32 %v5278_v34, %v3019_v36  ;;  %v5798_v40 = vpop.f32.mrb[33].mxu0  ;;  %v5382_v34 = vcombine.low %v3208_v21, %v3224_v22  ;;  %v5384_v36 = vcombine.low %v3209_v23, %v3225_v24 }
 0x2b3   :  { %v3162_v40 = vld [vmem:[%s7635_s7 + $0x1a0] sm:$0xff] }
 0x2b4   :  { %v3023_v41 = vmax.f32 %v3020_v39, 0.0  ;;  %v3146_v39 = vld [vmem:[%s7635_s7 + $0x120] sm:$0xff] }
 0x2b5   :  { %v5322_v51 = vcombine.low %v3146_v39, %v3162_v40 }
 0x2b6   :  { %5808 = vmatmul.mubr.msk.f32.vlgmr.msra.gmra.mrb[32].mxu1 %vm2949_vm1, %v3023_v41  ;;  %v3147_v41 = vld [vmem:[%s7635_s7 + $0x128] sm:$0xff] }
 0x2b7   :  { %4092 = vmatpush1.bf16.msra.mxu1 %v5284_v25  ;;  %4123 = vmatprep.mubr.bf16.mxu1 %v6159_v59  ;;  %v5350_v25 = vcombine.low %v3176_v13, %v3192_v14 }
 0x2b8   :  { %4093 = vmatprep.subr.bf16.mxu1 %v5317_v42  ;;  %v3163_v42 = vld [vmem:[%s7635_s7 + $0x1a8] sm:$0xff] }
 0x2b9   :  { %v5324_v52 = vcombine.low %v3147_v41, %v3163_v42 }
 0x2bb   :  { %4094 = vmatpush1.bf16.msra.mxu1 %v5316_v45  ;;  %v5323_v45 = vcombine.high %v3146_v39, %v3162_v40 }
 0x2bc   :  { %4095 = vmatprep.subr.bf16.mxu1 %v5349_v46  ;;  %v5325_v46 = vcombine.high %v3147_v41, %v3163_v42 }
 0x2bf   :  { %4096 = vmatpush1.bf16.msra.mxu1 %v5348_v47  ;;  %v3178_v47 = vld [vmem:[%s7635_s7 + $0x220] sm:$0xff] }
 0x2c0   :  { %4097 = vmatprep.subr.bf16.mxu1 %v5381_v55  ;;  %v5355_v53 = vcombine.high %v3178_v47, %v3194_v48  ;;  %v3210_v55 = vld [vmem:[%s7635_s7 + $0x320] sm:$0xff] }
 0x2c1   :  { %v5387_v62 = vcombine.high %v3210_v55, %v3226_v56 }
 0x2c3   :  { %4098 = vmatpush1.bf16.msra.mxu1 %v5380_v54  ;;  %v5357_v54 = vcombine.high %v3179_v49, %v3195_v50 }
 0x2c4   :  { %4173 = vmatprep.subr.bf16.mxu1 %v5289_v0  ;;  %v3116_v0 = vld [vmem:[%s7635_s7 + $0x30] sm:$0xff] }
 0x389   :  { %v3104_v2 = vpop.f32.mrb[32].mxu1 }
 0x38a   :  { %v3105_v3 = vadd.f32 %v5280_v1, %v3104_v2  ;;  %v5809_v4 = vpop.f32.mrb[33].mxu1  ;;  %v3132_v1 = vld [vmem:[%s7635_s7 + $0xb0] sm:$0xff]  ;;  %v3117_v2 = vld [vmem:[%s7635_s7 + $0x38] sm:$0xff] }
 0x38b   :  { %v5386_v4 = vcombine.low %v3210_v55, %v3226_v56  ;;  %v5295_v6 = vcombine.high %v3116_v0, %v3132_v1  ;;  %v5294_v13 = vcombine.low %v3116_v0, %v3132_v1 }
 0x38c   :  { %v3108_v9 = vmax.f32 %v3105_v3, 0.0  ;;  %v3133_v3 = vld [vmem:[%s7635_s7 + $0xb8] sm:$0xff] }
 0x38d   :  { %v5297_v7 = vcombine.high %v3117_v2, %v3133_v3  ;;  %v5296_v14 = vcombine.low %v3117_v2, %v3133_v3 }
 0x38e   :  { %v7132_v10 = vpack.c.bf16 %v3108_v9, %v3108_v9  ;;  %v3164_v9 = vld [vmem:[%s7635_s7 + $0x1b0] sm:$0xff] }
 0x38f   :  { %v5327_v15 = vcombine.high %v3148_v8, %v3164_v9  ;;  %v5326_v21 = vcombine.low %v3148_v8, %v3164_v9 }
 0x390   :  { %5410 = vmatmul.mubr.msk.bf16.vlgmr.msra.gmra.mrb[36].mxu0 %vm4046_vm2, %v7132_v10  ;;  %5411 = vmatmul.mubr.msk.bf16.vlgmr.msra.gmra.mrb[36].mxu1 %vm4046_vm2, %v7132_v10 }
 0x391   :  { %4133 = vmatpush1.bf16.msra.mxu0 %v5286_v60  ;;  %4174 = vmatpush1.bf16.msra.mxu1 %v5288_v63  ;;  %v5354_v60 = vcombine.low %v3178_v47, %v3194_v48  ;;  %v5389_v63 = vcombine.high %v3211_v57, %v3227_v58 }
 0x392   :  { %4134 = vmatprep.subr.bf16.mxu0 %v5319_v11  ;;  %4175 = vmatprep.subr.bf16.mxu1 %v5321_v12  ;;  %v3149_v11 = vld [vmem:[%s7635_s7 + $0x138] sm:$0xff] }
 0x393   :  { %4164 = vmatprep.mubr.bf16.mxu0 %v6159_v59  ;;  %4205 = vmatprep.mubr.bf16.mxu1 %v6159_v59  ;;  %v3165_v12 = vld [vmem:[%s7635_s7 + $0x1b8] sm:$0xff] }
 0x394   :  { %v5329_v16 = vcombine.high %v3149_v11, %v3165_v12  ;;  %v5328_v22 = vcombine.low %v3149_v11, %v3165_v12 }
 0x395   :  { %4135 = vmatpush1.bf16.msra.mxu0 %v5318_v17  ;;  %4176 = vmatpush1.bf16.msra.mxu1 %v5320_v18  ;;  %v3180_v17 = vld [vmem:[%s7635_s7 + $0x230] sm:$0xff] }
 0x396   :  { %4136 = vmatprep.subr.bf16.mxu0 %v5351_v19  ;;  %4177 = vmatprep.subr.bf16.mxu1 %v5353_v20  ;;  %v3196_v18 = vld [vmem:[%s7635_s7 + $0x2b0] sm:$0xff]  ;;  %v3181_v19 = vld [vmem:[%s7635_s7 + $0x238] sm:$0xff] }
 0x397   :  { %v3197_v20 = vld [vmem:[%s7635_s7 + $0x2b8] sm:$0xff]  ;;  %v5359_v23 = vcombine.high %v3180_v17, %v3196_v18  ;;  %v5358_v29 = vcombine.low %v3180_v17, %v3196_v18 }
 0x398   :  { %v5361_v24 = vcombine.high %v3181_v19, %v3197_v20  ;;  %v5360_v31 = vcombine.low %v3181_v19, %v3197_v20 }
 0x399   :  { %4137 = vmatpush1.bf16.msra.mxu0 %v5350_v25  ;;  %4178 = vmatpush1.bf16.msra.mxu1 %v5352_v26  ;;  %v3212_v25 = vld [vmem:[%s7635_s7 + $0x330] sm:$0xff] }
 0x39a   :  { %4138 = vmatprep.subr.bf16.mxu0 %v5383_v27  ;;  %4179 = vmatprep.subr.bf16.mxu1 %v5385_v28  ;;  %v3228_v26 = vld [vmem:[%s7635_s7 + $0x3b0] sm:$0xff]  ;;  %v3213_v27 = vld [vmem:[%s7635_s7 + $0x338] sm:$0xff] }
 0x39b   :  { %v3229_v28 = vld [vmem:[%s7635_s7 + $0x3b8] sm:$0xff]  ;;  %v5391_v32 = vcombine.high %v3212_v25, %v3228_v26  ;;  %v5390_v39 = vcombine.low %v3212_v25, %v3228_v26 }
 0x39c   :  { %v5393_v33 = vcombine.high %v3213_v27, %v3229_v28  ;;  %v5392_v40 = vcombine.low %v3213_v27, %v3229_v28 }
 0x39d   :  { %4139 = vmatpush1.bf16.msra.mxu0 %v5382_v34  ;;  %4180 = vmatpush1.bf16.msra.mxu1 %v5384_v36  ;;  %v3118_v34 = vld [vmem:[%s7635_s7 + $0x40] sm:$0xff] }
 0x39e   :  { %4214 = vmatprep.subr.bf16.mxu0 %v5291_v37  ;;  %4255 = vmatprep.subr.bf16.mxu1 %v5293_v38  ;;  %v3134_v36 = vld [vmem:[%s7635_s7 + $0xc0] sm:$0xff]  ;;  %v3119_v37 = vld [vmem:[%s7635_s7 + $0x48] sm:$0xff] }
 0x39f   :  { %v3135_v38 = vld [vmem:[%s7635_s7 + $0xc8] sm:$0xff]  ;;  %v5299_v41 = vcombine.high %v3118_v34, %v3134_v36  ;;  %v5298_v47 = vcombine.low %v3118_v34, %v3134_v36 }
 0x3a0   :  { %5412 = vmatmul.mubr.msk.bf16.vlgmr.msra.gmra.mrb[40].mxu0 %vm4046_vm2, %v7132_v10  ;;  %5413 = vmatmul.mubr.msk.bf16.vlgmr.msra.gmra.mrb[40].mxu1 %vm4046_vm2, %v7132_v10  ;;  %v5301_v42 = vcombine.high %v3119_v37, %v3135_v38  ;;  %v5300_v48 = vcombine.low %v3119_v37, %v3135_v38 }
 0x3a1   :  { %4215 = vmatpush1.bf16.msra.mxu0 %v5290_v43  ;;  %4256 = vmatpush1.bf16.msra.mxu1 %v5292_v44  ;;  %v3150_v43 = vld [vmem:[%s7635_s7 + $0x140] sm:$0xff] }
 0x3a2   :  { %4216 = vmatprep.subr.bf16.mxu0 %v5323_v45  ;;  %4257 = vmatprep.subr.bf16.mxu1 %v5325_v46  ;;  %v3166_v44 = vld [vmem:[%s7635_s7 + $0x1c0] sm:$0xff]  ;;  %v3151_v45 = vld [vmem:[%s7635_s7 + $0x148] sm:$0xff] }
 0x3a3   :  { %4246 = vmatprep.mubr.bf16.mxu0 %v6159_v59  ;;  %4287 = vmatprep.mubr.bf16.mxu1 %v6159_v59  ;;  %v3167_v46 = vld [vmem:[%s7635_s7 + $0x1c8] sm:$0xff]  ;;  %v5331_v49 = vcombine.high %v3150_v43, %v3166_v44  ;;  %v5330_v55 = vcombine.low %v3150_v43, %v3166_v44 }
 0x3a4   :  { %v5333_v50 = vcombine.high %v3151_v45, %v3167_v46  ;;  %v5332_v56 = vcombine.low %v3151_v45, %v3167_v46 }
 0x3a5   :  { %4217 = vmatpush1.bf16.msra.mxu0 %v5322_v51  ;;  %4258 = vmatpush1.bf16.msra.mxu1 %v5324_v52  ;;  %v3182_v51 = vld [vmem:[%s7635_s7 + $0x240] sm:$0xff] }
 0x3a6   :  { %4218 = vmatprep.subr.bf16.mxu0 %v5355_v53  ;;  %4259 = vmatprep.subr.bf16.mxu1 %v5357_v54  ;;  %v3198_v52 = vld [vmem:[%s7635_s7 + $0x2c0] sm:$0xff]  ;;  %v3183_v53 = vld [vmem:[%s7635_s7 + $0x248] sm:$0xff] }
 0x3a7   :  { %v3199_v54 = vld [vmem:[%s7635_s7 + $0x2c8] sm:$0xff]  ;;  %v5363_v57 = vcombine.high %v3182_v51, %v3198_v52  ;;  %v5362_v0 = vcombine.low %v3182_v51, %v3198_v52 }
 0x3a8   :  { %v5365_v58 = vcombine.high %v3183_v53, %v3199_v54  ;;  %v5364_v1 = vcombine.low %v3183_v53, %v3199_v54 }
 0x3a9   :  { %4219 = vmatpush1.bf16.msra.mxu0 %v5354_v60  ;;  %4260 = vmatpush1.bf16.msra.mxu1 %v5356_v61  ;;  %v3214_v60 = vld [vmem:[%s7635_s7 + $0x340] sm:$0xff] }
 0x3aa   :  { %4220 = vmatprep.subr.bf16.mxu0 %v5387_v62  ;;  %4261 = vmatprep.subr.bf16.mxu1 %v5389_v63  ;;  %v3230_v61 = vld [vmem:[%s7635_s7 + $0x3c0] sm:$0xff]  ;;  %v3215_v62 = vld [vmem:[%s7635_s7 + $0x348] sm:$0xff] }
 0x3ab   :  { %v3231_v63 = vld [vmem:[%s7635_s7 + $0x3c8] sm:$0xff]  ;;  %v5395_v2 = vcombine.high %v3214_v60, %v3230_v61  ;;  %v5394_v8 = vcombine.low %v3214_v60, %v3230_v61 }
 0x3ac   :  { %v5397_v3 = vcombine.high %v3215_v62, %v3231_v63  ;;  %v5396_v9 = vcombine.low %v3215_v62, %v3231_v63 }
 0x3ad   :  { %4221 = vmatpush1.bf16.msra.mxu0 %v5386_v4  ;;  %4262 = vmatpush1.bf16.msra.mxu1 %v5388_v5  ;;  %v3120_v4 = vld [vmem:[%s7635_s7 + $0x50] sm:$0xff] }
 0x3ae   :  { %4296 = vmatprep.subr.bf16.mxu0 %v5295_v6  ;;  %4337 = vmatprep.subr.bf16.mxu1 %v5297_v7  ;;  %v3136_v5 = vld [vmem:[%s7635_s7 + $0xd0] sm:$0xff]  ;;  %v3121_v6 = vld [vmem:[%s7635_s7 + $0x58] sm:$0xff] }
 0x3af   :  { %v3137_v7 = vld [vmem:[%s7635_s7 + $0xd8] sm:$0xff]  ;;  %v5303_v11 = vcombine.high %v3120_v4, %v3136_v5  ;;  %v5302_v17 = vcombine.low %v3120_v4, %v3136_v5 }
 0x3b0   :  { %5414 = vmatmul.mubr.msk.bf16.vlgmr.msra.gmra.mrb[44].mxu0 %vm4046_vm2, %v7132_v10  ;;  %5415 = vmatmul.mubr.msk.bf16.vlgmr.msra.gmra.mrb[44].mxu1 %vm4046_vm2, %v7132_v10  ;;  %v5305_v12 = vcombine.high %v3121_v6, %v3137_v7  ;;  %v5304_v18 = vcombine.low %v3121_v6, %v3137_v7 }
 0x3b1   :  { %4297 = vmatpush1.bf16.msra.mxu0 %v5294_v13  ;;  %4338 = vmatpush1.bf16.msra.mxu1 %v5296_v14  ;;  %v3152_v13 = vld [vmem:[%s7635_s7 + $0x150] sm:$0xff] }
 0x3b2   :  { %4298 = vmatprep.subr.bf16.mxu0 %v5327_v15  ;;  %4339 = vmatprep.subr.bf16.mxu1 %v5329_v16  ;;  %v3168_v14 = vld [vmem:[%s7635_s7 + $0x1d0] sm:$0xff]  ;;  %v3153_v15 = vld [vmem:[%s7635_s7 + $0x158] sm:$0xff] }
 0x3b3   :  { %4328 = vmatprep.mubr.bf16.mxu0 %v6159_v59  ;;  %4369 = vmatprep.mubr.bf16.mxu1 %v6159_v59  ;;  %v3169_v16 = vld [vmem:[%s7635_s7 + $0x1d8] sm:$0xff]  ;;  %v5335_v19 = vcombine.high %v3152_v13, %v3168_v14  ;;  %v5334_v25 = vcombine.low %v3152_v13, %v3168_v14 }
 0x3b4   :  { %v5337_v20 = vcombine.high %v3153_v15, %v3169_v16  ;;  %v5336_v26 = vcombine.low %v3153_v15, %v3169_v16 }
 0x3b5   :  { %4299 = vmatpush1.bf16.msra.mxu0 %v5326_v21  ;;  %4340 = vmatpush1.bf16.msra.mxu1 %v5328_v22  ;;  %v3184_v21 = vld [vmem:[%s7635_s7 + $0x250] sm:$0xff] }
 0x3b6   :  { %4300 = vmatprep.subr.bf16.mxu0 %v5359_v23  ;;  %4341 = vmatprep.subr.bf16.mxu1 %v5361_v24  ;;  %v3200_v22 = vld [vmem:[%s7635_s7 + $0x2d0] sm:$0xff]  ;;  %v3185_v23 = vld [vmem:[%s7635_s7 + $0x258] sm:$0xff] }
 0x3b7   :  { %v3201_v24 = vld [vmem:[%s7635_s7 + $0x2d8] sm:$0xff]  ;;  %v5367_v27 = vcombine.high %v3184_v21, %v3200_v22  ;;  %v5366_v34 = vcombine.low %v3184_v21, %v3200_v22 }
 0x3b8   :  { %v5369_v28 = vcombine.high %v3185_v23, %v3201_v24  ;;  %v5368_v36 = vcombine.low %v3185_v23, %v3201_v24 }
 0x3b9   :  { %4301 = vmatpush1.bf16.msra.mxu0 %v5358_v29  ;;  %4342 = vmatpush1.bf16.msra.mxu1 %v5360_v31  ;;  %v3216_v29 = vld [vmem:[%s7635_s7 + $0x350] sm:$0xff] }
 0x3ba   :  { %4302 = vmatprep.subr.bf16.mxu0 %v5391_v32  ;;  %4343 = vmatprep.subr.bf16.mxu1 %v5393_v33  ;;  %v3232_v31 = vld [vmem:[%s7635_s7 + $0x3d0] sm:$0xff]  ;;  %v3217_v32 = vld [vmem:[%s7635_s7 + $0x358] sm:$0xff] }
 0x3bb   :  { %v3233_v33 = vld [vmem:[%s7635_s7 + $0x3d8] sm:$0xff]  ;;  %v5399_v37 = vcombine.high %v3216_v29, %v3232_v31  ;;  %v5398_v43 = vcombine.low %v3216_v29, %v3232_v31 }
 0x3bc   :  { %v5401_v38 = vcombine.high %v3217_v32, %v3233_v33  ;;  %v5400_v44 = vcombine.low %v3217_v32, %v3233_v33 }
 0x3bd   :  { %4303 = vmatpush1.bf16.msra.mxu0 %v5390_v39  ;;  %4344 = vmatpush1.bf16.msra.mxu1 %v5392_v40  ;;  %v3122_v39 = vld [vmem:[%s7635_s7 + $0x60] sm:$0xff] }
 0x3be   :  { %4378 = vmatprep.subr.bf16.mxu0 %v5299_v41  ;;  %4419 = vmatprep.subr.bf16.mxu1 %v5301_v42  ;;  %v3138_v40 = vld [vmem:[%s7635_s7 + $0xe0] sm:$0xff]  ;;  %v3123_v41 = vld [vmem:[%s7635_s7 + $0x68] sm:$0xff] }
 0x3bf   :  { %v3139_v42 = vld [vmem:[%s7635_s7 + $0xe8] sm:$0xff]  ;;  %v5307_v45 = vcombine.high %v3122_v39, %v3138_v40  ;;  %v5306_v51 = vcombine.low %v3122_v39, %v3138_v40 }
 0x3c0   :  { %5416 = vmatmul.mubr.msk.bf16.vlgmr.msra.gmra.mrb[48].mxu0 %vm4046_vm2, %v7132_v10  ;;  %5417 = vmatmul.mubr.msk.bf16.vlgmr.msra.gmra.mrb[48].mxu1 %vm4046_vm2, %v7132_v10  ;;  %v5309_v46 = vcombine.high %v3123_v41, %v3139_v42  ;;  %v5308_v52 = vcombine.low %v3123_v41, %v3139_v42 }
 0x3c1   :  { %4379 = vmatpush1.bf16.msra.mxu0 %v5298_v47  ;;  %4420 = vmatpush1.bf16.msra.mxu1 %v5300_v48  ;;  %v3154_v47 = vld [vmem:[%s7635_s7 + $0x160] sm:$0xff] }
 0x3c2   :  { %4380 = vmatprep.subr.bf16.mxu0 %v5331_v49  ;;  %4421 = vmatprep.subr.bf16.mxu1 %v5333_v50  ;;  %v3170_v48 = vld [vmem:[%s7635_s7 + $0x1e0] sm:$0xff]  ;;  %v3155_v49 = vld [vmem:[%s7635_s7 + $0x168] sm:$0xff] }
 0x3c3   :  { %4410 = vmatprep.mubr.bf16.mxu0 %v6159_v59  ;;  %4451 = vmatprep.mubr.bf16.mxu1 %v6159_v59  ;;  %v3171_v50 = vld [vmem:[%s7635_s7 + $0x1e8] sm:$0xff]  ;;  %v5339_v53 = vcombine.high %v3154_v47, %v3170_v48  ;;  %v5338_v60 = vcombine.low %v3154_v47, %v3170_v48  ;;  %v7502_v47 = vsub.s32 1, %v6288_v30  ;;  %v7505_v48 = vsub.s32 3, %v6288_v30 }
 0x3c4   :  { %v5341_v54 = vcombine.high %v3155_v49, %v3171_v50  ;;  %v5340_v61 = vcombine.low %v3155_v49, %v3171_v50 }
 0x3c5   :  { %4381 = vmatpush1.bf16.msra.mxu0 %v5330_v55  ;;  %4422 = vmatpush1.bf16.msra.mxu1 %v5332_v56  ;;  %v3186_v55 = vld [vmem:[%s7635_s7 + $0x260] sm:$0xff] }
 0x3c6   :  { %4382 = vmatprep.subr.bf16.mxu0 %v5363_v57  ;;  %4423 = vmatprep.subr.bf16.mxu1 %v5365_v58  ;;  %v3202_v56 = vld [vmem:[%s7635_s7 + $0x2e0] sm:$0xff]  ;;  %v3187_v57 = vld [vmem:[%s7635_s7 + $0x268] sm:$0xff] }
 0x3c7   :  { %v3203_v58 = vld [vmem:[%s7635_s7 + $0x2e8] sm:$0xff]  ;;  %v5371_v62 = vcombine.high %v3186_v55, %v3202_v56  ;;  %v5370_v4 = vcombine.low %v3186_v55, %v3202_v56 }
 0x3c8   :  { %v5373_v63 = vcombine.high %v3187_v57, %v3203_v58  ;;  %v5372_v5 = vcombine.low %v3187_v57, %v3203_v58 }
 0x3c9   :  { %4383 = vmatpush1.bf16.msra.mxu0 %v5362_v0  ;;  %4424 = vmatpush1.bf16.msra.mxu1 %v5364_v1  ;;  %v3218_v0 = vld [vmem:[%s7635_s7 + $0x360] sm:$0xff] }
 0x3ca   :  { %4384 = vmatprep.subr.bf16.mxu0 %v5395_v2  ;;  %4425 = vmatprep.subr.bf16.mxu1 %v5397_v3  ;;  %v3234_v1 = vld [vmem:[%s7635_s7 + $0x3e0] sm:$0xff]  ;;  %v3219_v2 = vld [vmem:[%s7635_s7 + $0x368] sm:$0xff] }
 0x3cb   :  { %v3235_v3 = vld [vmem:[%s7635_s7 + $0x3e8] sm:$0xff]  ;;  %v5403_v6 = vcombine.high %v3218_v0, %v3234_v1  ;;  %v5402_v13 = vcombine.low %v3218_v0, %v3234_v1 }
 0x3cc   :  { %v5405_v7 = vcombine.high %v3219_v2, %v3235_v3  ;;  %v5404_v14 = vcombine.low %v3219_v2, %v3235_v3 }
 0x3cd   :  { %4385 = vmatpush1.bf16.msra.mxu0 %v5394_v8  ;;  %4426 = vmatpush1.bf16.msra.mxu1 %v5396_v9  ;;  %v3124_v8 = vld [vmem:[%s7635_s7 + $0x70] sm:$0xff] }
 0x3ce   :  { %4460 = vmatprep.subr.bf16.mxu0 %v5303_v11  ;;  %4501 = vmatprep.subr.bf16.mxu1 %v5305_v12  ;;  %v3140_v9 = vld [vmem:[%s7635_s7 + $0xf0] sm:$0xff]  ;;  %v3125_v11 = vld [vmem:[%s7635_s7 + $0x78] sm:$0xff] }
 0x3cf   :  { %v3141_v12 = vld [vmem:[%s7635_s7 + $0xf8] sm:$0xff]  ;;  %v5311_v15 = vcombine.high %v3124_v8, %v3140_v9  ;;  %v5310_v21 = vcombine.low %v3124_v8, %v3140_v9  ;;  %v7521_v8 = vsub.s32 7, %v6288_v30 }
 0x3d0   :  { %5418 = vmatmul.mubr.msk.bf16.vlgmr.msra.gmra.mrb[52].mxu0 %vm4046_vm2, %v7132_v10  ;;  %5419 = vmatmul.mubr.msk.bf16.vlgmr.msra.gmra.mrb[52].mxu1 %vm4046_vm2, %v7132_v10  ;;  %v5313_v16 = vcombine.high %v3125_v11, %v3141_v12  ;;  %v5312_v22 = vcombine.low %v3125_v11, %v3141_v12 }
 0x3d1   :  { %4461 = vmatpush1.bf16.msra.mxu0 %v5302_v17  ;;  %4502 = vmatpush1.bf16.msra.mxu1 %v5304_v18  ;;  %v3156_v17 = vld [vmem:[%s7635_s7 + $0x170] sm:$0xff] }
 0x3d2   :  { %4462 = vmatprep.subr.bf16.mxu0 %v5335_v19  ;;  %4503 = vmatprep.subr.bf16.mxu1 %v5337_v20  ;;  %v3172_v18 = vld [vmem:[%s7635_s7 + $0x1f0] sm:$0xff]  ;;  %v3157_v19 = vld [vmem:[%s7635_s7 + $0x178] sm:$0xff] }
 0x3d3   :  { %4492 = vmatprep.mubr.bf16.mxu0 %v6159_v59  ;;  %4533 = vmatprep.mubr.bf16.mxu1 %v6159_v59  ;;  %v3173_v20 = vld [vmem:[%s7635_s7 + $0x1f8] sm:$0xff]  ;;  %v5343_v23 = vcombine.high %v3156_v17, %v3172_v18  ;;  %v5342_v29 = vcombine.low %v3156_v17, %v3172_v18 }
 0x3d4   :  { %v5345_v24 = vcombine.high %v3157_v19, %v3173_v20  ;;  %v5344_v31 = vcombine.low %v3157_v19, %v3173_v20 }
 0x3d5   :  { %4463 = vmatpush1.bf16.msra.mxu0 %v5334_v25  ;;  %4504 = vmatpush1.bf16.msra.mxu1 %v5336_v26  ;;  %v3188_v25 = vld [vmem:[%s7635_s7 + $0x270] sm:$0xff] }
 0x3d6   :  { %4464 = vmatprep.subr.bf16.mxu0 %v5367_v27  ;;  %4505 = vmatprep.subr.bf16.mxu1 %v5369_v28  ;;  %v3204_v26 = vld [vmem:[%s7635_s7 + $0x2f0] sm:$0xff]  ;;  %v3189_v27 = vld [vmem:[%s7635_s7 + $0x278] sm:$0xff] }
 0x3d7   :  { %v3205_v28 = vld [vmem:[%s7635_s7 + $0x2f8] sm:$0xff]  ;;  %v5375_v32 = vcombine.high %v3188_v25, %v3204_v26  ;;  %v5374_v39 = vcombine.low %v3188_v25, %v3204_v26 }
 0x3d8   :  { %v5377_v33 = vcombine.high %v3189_v27, %v3205_v28  ;;  %v5376_v40 = vcombine.low %v3189_v27, %v3205_v28 }
 0x3d9   :  { %4465 = vmatpush1.bf16.msra.mxu0 %v5366_v34  ;;  %4506 = vmatpush1.bf16.msra.mxu1 %v5368_v36  ;;  %v3220_v34 = vld [vmem:[%s7635_s7 + $0x370] sm:$0xff] }
 0x3da   :  { %4466 = vmatprep.subr.bf16.mxu0 %v5399_v37  ;;  %4507 = vmatprep.subr.bf16.mxu1 %v5401_v38  ;;  %v3236_v36 = vld [vmem:[%s7635_s7 + $0x3f0] sm:$0xff]  ;;  %v3221_v37 = vld [vmem:[%s7635_s7 + $0x378] sm:$0xff] }
 0x3db   :  { %v3237_v38 = vld [vmem:[%s7635_s7 + $0x3f8] sm:$0xff]  ;;  %v5407_v41 = vcombine.high %v3220_v34, %v3236_v36 }
 0x3dc   :  { %v5409_v42 = vcombine.high %v3221_v37, %v3237_v38 }
 0x3dd   :  { %4467 = vmatpush1.bf16.msra.mxu0 %v5398_v43  ;;  %4508 = vmatpush1.bf16.msra.mxu1 %v5400_v44  ;;  %v5406_v43 = vcombine.low %v3220_v34, %v3236_v36  ;;  %v5408_v44 = vcombine.low %v3221_v37, %v3237_v38 }
 0x3de   :  { %4542 = vmatprep.subr.bf16.mxu0 %v5307_v45  ;;  %4583 = vmatprep.subr.bf16.mxu1 %v5309_v46  ;;  %v7496_v45 = vsub.s32 2, %v6288_v30  ;;  %v3238_v46 = vld [vmem:[%s7638_s8] sm:$0xff] }
 0x3df   :  { %v3253_v50 = vrot.slane %v3238_v46, %v7502_v47 }
 0x3e0   :  { %5420 = vmatmul.mubr.msk.bf16.vlgmr.msra.gmra.mrb[56].mxu0 %vm4046_vm2, %v7132_v10  ;;  %5421 = vmatmul.mubr.msk.bf16.vlgmr.msra.gmra.mrb[56].mxu1 %vm4046_vm2, %v7132_v10 }
 0x3e1   :  { %4543 = vmatpush1.bf16.msra.mxu0 %v5306_v51  ;;  %4584 = vmatpush1.bf16.msra.mxu1 %v5308_v52  ;;  %v3261_v51 = vrot.slane %v3238_v46, %v7505_v48 }
 0x3e2   :  { %4544 = vmatprep.subr.bf16.mxu0 %v5339_v53  ;;  %4585 = vmatprep.subr.bf16.mxu1 %v5341_v54 }
 0x3e3   :  { %4574 = vmatprep.mubr.bf16.mxu0 %v6159_v59  ;;  %4615 = vmatprep.mubr.bf16.mxu1 %v6159_v59 }
 0x3e5   :  { %4545 = vmatpush1.bf16.msra.mxu0 %v5338_v60  ;;  %4586 = vmatpush1.bf16.msra.mxu1 %v5340_v61 }
 0x3e6   :  { %4546 = vmatprep.subr.bf16.mxu0 %v5371_v62  ;;  %4587 = vmatprep.subr.bf16.mxu1 %v5373_v63 }
 0x3e9   :  { %4547 = vmatpush1.bf16.msra.mxu0 %v5370_v4  ;;  %4588 = vmatpush1.bf16.msra.mxu1 %v5372_v5  ;;  %v7512_v5 = vsub.s32 4, %v6288_v30 }
 0x3ea   :  { %4548 = vmatprep.subr.bf16.mxu0 %v5403_v6  ;;  %4589 = vmatprep.subr.bf16.mxu1 %v5405_v7  ;;  %v7515_v6 = vsub.s32 6, %v6288_v30  ;;  %v7518_v7 = vsub.s32 5, %v6288_v30 }
 0x3eb   :  { %v3265_v9 = vrot.slane %v3238_v46, %v7512_v5 }
 0x3ec   :  { %v3273_v11 = vrot.slane %v3238_v46, %v7515_v6  ;;  %v3269_v12 = vrot.slane %v3238_v46, %v7518_v7 }
 0x3ed   :  { %4549 = vmatpush1.bf16.msra.mxu0 %v5402_v13  ;;  %4590 = vmatpush1.bf16.msra.mxu1 %v5404_v14  ;;  %v3277_v13 = vrot.slane %v3238_v46, %v7521_v8 }
 0x3ee   :  { %4624 = vmatprep.subr.bf16.mxu0 %v5311_v15  ;;  %4665 = vmatprep.subr.bf16.mxu1 %v5313_v16 }
 0x3f0   :  { %5422 = vmatmul.mubr.msk.bf16.vlgmr.msra.gmra.mrb[60].mxu0 %vm4046_vm2, %v7132_v10  ;;  %5423 = vmatmul.mubr.msk.bf16.vlgmr.msra.gmra.mrb[60].mxu1 %vm4046_vm2, %v7132_v10 }
 0x3f1   :  { %4625 = vmatpush1.bf16.msra.mxu0 %v5310_v21  ;;  %4666 = vmatpush1.bf16.msra.mxu1 %v5312_v22 }
 0x3f2   :  { %4626 = vmatprep.subr.bf16.mxu0 %v5343_v23  ;;  %4667 = vmatprep.subr.bf16.mxu1 %v5345_v24 }
 0x3f3   :  { %4656 = vmatprep.mubr.bf16.mxu0 %v6159_v59  ;;  %4697 = vmatprep.mubr.bf16.mxu1 %v6159_v59  ;;  %v7493_v59 = vsub.s32 0, %v6288_v30 }
 0x3f5   :  { %4627 = vmatpush1.bf16.msra.mxu0 %v5342_v29  ;;  %4668 = vmatpush1.bf16.msra.mxu1 %v5344_v31  ;;  %v3249_v49 = vrot.slane %v3238_v46, %v7493_v59 }
 0x3f6   :  { %4628 = vmatprep.subr.bf16.mxu0 %v5375_v32  ;;  %4669 = vmatprep.subr.bf16.mxu1 %v5377_v33 }
 0x3f9   :  { %4629 = vmatpush1.bf16.msra.mxu0 %v5374_v39  ;;  %4670 = vmatpush1.bf16.msra.mxu1 %v5376_v40 }
 0x3fa   :  { %4630 = vmatprep.subr.bf16.mxu0 %v5407_v41  ;;  %4671 = vmatprep.subr.bf16.mxu1 %v5409_v42 }
 0x3fd   :  { %4631 = vmatpush1.bf16.msra.mxu0 %v5406_v43  ;;  %4672 = vmatpush1.bf16.msra.mxu1 %v5408_v44 }
 0x400   :  { %5424 = vmatmul.mubr.msk.bf16.vlgmr.msra.gmra.mrb[64].mxu0 %vm4046_vm2, %v7132_v10  ;;  %5425 = vmatmul.mubr.msk.bf16.vlgmr.msra.gmra.mrb[64].mxu1 %vm4046_vm2, %v7132_v10  ;;  %v3257_v10 = vrot.slane %v3238_v46, %v7496_v45 }
 0x463   :  { %v4084_v52 = vpop.f32.mrb[36].mxu0  ;;  %v4125_v53 = vpop.f32.mrb[36].mxu1 }
 0x464   :  { %v4085_v54 = vadd.f32 %v4084_v52, %v3249_v49  ;;  %v4126_v55 = vadd.f32 %v4125_v53, %v3257_v10  ;;  %v4086_v56 = vpop.f32.mrb[37].mxu0  ;;  %v4127_v57 = vpop.f32.mrb[37].mxu1  ;;  %v7532_v10 = vld [vmem:[%s7638_s8 + $0x8] sm:$0xff] }
 0x465   :  { %v4087_v58 = vadd.f32 %v4086_v56, %v3253_v50  ;;  %v4128_v60 = vadd.f32 %v4127_v57, %v3261_v51  ;;  %v4088_v61 = vpop.f32.mrb[38].mxu0  ;;  %v4129_v62 = vpop.f32.mrb[38].mxu1  ;;  %v3281_v51 = vrot.slane %v7532_v10, %v7493_v59  ;;  %v3289_v52 = vrot.slane %v7532_v10, %v7496_v45 }
 0x466   :  { %v4706_v63 = vmul.f32 0.5, %v4085_v54  ;;  %v4708_v0 = vmul.f32 0.5, %v4126_v55  ;;  %v4089_v1 = vpop.f32.mrb[39].mxu0  ;;  %v4130_v2 = vpop.f32.mrb[39].mxu1  ;;  %v3285_v53 = vrot.slane %v7532_v10, %v7502_v47  ;;  %v3293_v54 = vrot.slane %v7532_v10, %v7505_v48 }
 0x467   :  { %v4707_v3 = vmul.f32 0.5, %v4087_v58  ;;  %v4709_v4 = vmul.f32 0.5, %v4128_v60 }
 0x468   :  { %6091 = vtanh.f32 %v4706_v63 }
 0x469   :  { %6093 = vtanh.f32 %v4708_v0 }
 0x46a   :  { %6095 = vtanh.f32 %v4707_v3 }
 0x46b   :  { %6097 = vtanh.f32 %v4709_v4 }
 0x472   :  { %v6092_v14 = vpop.eup %6091 }
 0x473   :  { %v6094_v15 = vpop.eup %6093  ;;  %v4770_v16 = vadd.f32 1.0, %v6092_v14  ;;  %v4166_v17 = vpop.f32.mrb[40].mxu0 }
 0x474   :  { %v4207_v18 = vpop.f32.mrb[40].mxu1  ;;  %v6096_v19 = vpop.eup %6095  ;;  %v4772_v20 = vadd.f32 1.0, %v6094_v15  ;;  %v4167_v21 = vadd.f32 %v4166_v17, %v3265_v9 }
 0x475   :  { %v4208_v22 = vadd.f32 %v4207_v18, %v3273_v11  ;;  %v4168_v23 = vpop.f32.mrb[41].mxu0  ;;  %v4209_v30 = vpop.f32.mrb[41].mxu1  ;;  %v4802_v25 = vmul.f32 0.5, %v4770_v16  ;;  %v4771_v26 = vadd.f32 1.0, %v6096_v19 }
 0x476   :  { %v6098_v24 = vpop.eup %6097  ;;  %v4169_v27 = vadd.f32 %v4168_v23, %v3269_v12  ;;  %v4210_v28 = vadd.f32 %v4209_v30, %v3277_v13  ;;  %v4170_v29 = vpop.f32.mrb[42].mxu0  ;;  %v4804_v32 = vmul.f32 0.5, %v4772_v20  ;;  %v4710_v34 = vmul.f32 0.5, %v4167_v21 }
 0x477   :  { %v4211_v31 = vpop.f32.mrb[42].mxu1  ;;  %v4773_v33 = vadd.f32 1.0, %v6098_v24  ;;  %v4712_v36 = vmul.f32 0.5, %v4208_v22  ;;  %v4171_v37 = vpop.f32.mrb[43].mxu0  ;;  %v4803_v39 = vmul.f32 0.5, %v4771_v26  ;;  %v3297_v29 = vrot.slane %v7532_v10, %v7512_v5 }
 0x478   :  { %v4212_v38 = vpop.f32.mrb[43].mxu1  ;;  %v4711_v40 = vmul.f32 0.5, %v4169_v27  ;;  %v4713_v41 = vmul.f32 0.5, %v4210_v28  ;;  %6099 = vtanh.f32 %v4710_v34  ;;  %v3305_v31 = vrot.slane %v7532_v10, %v7515_v6 }
 0x479   :  { %v4805_v42 = vmul.f32 0.5, %v4773_v33  ;;  %v4866_v43 = vcombine.low %v4802_v25, %v4803_v39  ;;  %6101 = vtanh.f32 %v4712_v36  ;;  %v3309_v33 = vrot.slane %v7532_v10, %v7521_v8 }
 0x47a   :  { %6103 = vtanh.f32 %v4711_v40 }
 0x47b   :  { %v4867_v44 = vcombine.low %v4804_v32, %v4805_v42  ;;  %v4874_v46 = vrot.slane %v4866_v43, %v6303_v35  ;;  %6105 = vtanh.f32 %v4713_v41  ;;  %v3301_v32 = vrot.slane %v7532_v10, %v7518_v7 }
 0x47d   :  { %v4881_v49 = vrot.slane %v4867_v44, %v6303_v35 }
 0x47f   :  { %v4882_v50 = vcombine.low %v4874_v46, %v4881_v49 }
 0x481   :  { %5010 = vst [vmem:[%s7639_s9] sm:$0xff] %v4882_v50 }
 0x482   :  { %v6100_v55 = vpop.eup %6099 }
 0x483   :  { %v6102_v56 = vpop.eup %6101  ;;  %v4774_v57 = vadd.f32 1.0, %v6100_v55  ;;  %v4248_v58 = vpop.f32.mrb[44].mxu0 }
 0x484   :  { %v4289_v60 = vpop.f32.mrb[44].mxu1  ;;  %v6104_v61 = vpop.eup %6103  ;;  %v4776_v62 = vadd.f32 1.0, %v6102_v56  ;;  %v4249_v63 = vadd.f32 %v4248_v58, %v3281_v51 }
 0x485   :  { %v4290_v0 = vadd.f32 %v4289_v60, %v3289_v52  ;;  %v4250_v1 = vpop.f32.mrb[45].mxu0  ;;  %v4291_v2 = vpop.f32.mrb[45].mxu1  ;;  %v4806_v4 = vmul.f32 0.5, %v4774_v57  ;;  %v4775_v9 = vadd.f32 1.0, %v6104_v61 }
 0x486   :  { %v6106_v3 = vpop.eup %6105  ;;  %v4251_v11 = vadd.f32 %v4250_v1, %v3285_v53  ;;  %v4292_v12 = vadd.f32 %v4291_v2, %v3293_v54  ;;  %v4252_v13 = vpop.f32.mrb[46].mxu0  ;;  %v4808_v15 = vmul.f32 0.5, %v4776_v62  ;;  %v4714_v17 = vmul.f32 0.5, %v4249_v63 }
 0x487   :  { %v4293_v14 = vpop.f32.mrb[46].mxu1  ;;  %v4777_v16 = vadd.f32 1.0, %v6106_v3  ;;  %v4716_v18 = vmul.f32 0.5, %v4290_v0  ;;  %v4253_v19 = vpop.f32.mrb[47].mxu0  ;;  %v4807_v21 = vmul.f32 0.5, %v4775_v9 }
 0x488   :  { %v4294_v20 = vpop.f32.mrb[47].mxu1  ;;  %v4715_v22 = vmul.f32 0.5, %v4251_v11  ;;  %v4717_v23 = vmul.f32 0.5, %v4292_v12  ;;  %6107 = vtanh.f32 %v4714_v17  ;;  %v7563_v11 = vld [vmem:[%s7638_s8 + $0x10] sm:$0xff] }
 0x489   :  { %v4809_v30 = vmul.f32 0.5, %v4777_v16  ;;  %v4883_v24 = vcombine.low %v4806_v4, %v4807_v21  ;;  %6109 = vtanh.f32 %v4716_v18  ;;  %v3313_v13 = vrot.slane %v7563_v11, %v7493_v59 }
 0x48a   :  { %6111 = vtanh.f32 %v4715_v22  ;;  %v3321_v14 = vrot.slane %v7563_v11, %v7496_v45  ;;  %v3325_v16 = vrot.slane %v7563_v11, %v7505_v48 }
 0x48b   :  { %v4884_v25 = vcombine.low %v4808_v15, %v4809_v30  ;;  %v4891_v26 = vrot.slane %v4883_v24, %v6303_v35  ;;  %6113 = vtanh.f32 %v4717_v23  ;;  %v3317_v15 = vrot.slane %v7563_v11, %v7502_v47 }
 0x48d   :  { %v4898_v27 = vrot.slane %v4884_v25, %v6303_v35 }
 0x48f   :  { %v4899_v28 = vcombine.low %v4891_v26, %v4898_v27 }
 0x491   :  { %5011 = vst [vmem:[%s7639_s9 + $0x8] sm:$0xff] %v4899_v28 }
 0x492   :  { %v6108_v34 = vpop.eup %6107 }
 0x493   :  { %v6110_v36 = vpop.eup %6109  ;;  %v4778_v37 = vadd.f32 1.0, %v6108_v34  ;;  %v4330_v38 = vpop.f32.mrb[48].mxu0 }
 0x494   :  { %v4371_v39 = vpop.f32.mrb[48].mxu1  ;;  %v6112_v40 = vpop.eup %6111  ;;  %v4780_v41 = vadd.f32 1.0, %v6110_v36  ;;  %v4331_v42 = vadd.f32 %v4330_v38, %v3297_v29 }
 0x495   :  { %v4372_v43 = vadd.f32 %v4371_v39, %v3305_v31  ;;  %v4332_v44 = vpop.f32.mrb[49].mxu0  ;;  %v4373_v46 = vpop.f32.mrb[49].mxu1  ;;  %v4810_v50 = vmul.f32 0.5, %v4778_v37  ;;  %v4779_v51 = vadd.f32 1.0, %v6112_v40 }
 0x496   :  { %v6114_v49 = vpop.eup %6113  ;;  %v4333_v52 = vadd.f32 %v4332_v44, %v3301_v32  ;;  %v4374_v53 = vadd.f32 %v4373_v46, %v3309_v33  ;;  %v4334_v54 = vpop.f32.mrb[50].mxu0  ;;  %v4812_v56 = vmul.f32 0.5, %v4780_v41  ;;  %v4718_v57 = vmul.f32 0.5, %v4331_v42 }
 0x497   :  { %v4375_v55 = vpop.f32.mrb[50].mxu1  ;;  %v4781_v10 = vadd.f32 1.0, %v6114_v49  ;;  %v4720_v58 = vmul.f32 0.5, %v4372_v43  ;;  %v4335_v60 = vpop.f32.mrb[51].mxu0  ;;  %v4811_v62 = vmul.f32 0.5, %v4779_v51  ;;  %v3329_v54 = vrot.slane %v7563_v11, %v7512_v5 }
 0x498   :  { %v4376_v61 = vpop.f32.mrb[51].mxu1  ;;  %v4719_v63 = vmul.f32 0.5, %v4333_v52  ;;  %v4721_v0 = vmul.f32 0.5, %v4374_v53  ;;  %6115 = vtanh.f32 %v4718_v57  ;;  %v3337_v55 = vrot.slane %v7563_v11, %v7515_v6 }
 0x499   :  { %v4813_v1 = vmul.f32 0.5, %v4781_v10  ;;  %v4900_v2 = vcombine.low %v4810_v50, %v4811_v62  ;;  %6117 = vtanh.f32 %v4720_v58  ;;  %v3341_v10 = vrot.slane %v7563_v11, %v7521_v8 }
 0x49a   :  { %6119 = vtanh.f32 %v4719_v63 }
 0x49b   :  { %v4901_v3 = vcombine.low %v4812_v56, %v4813_v1  ;;  %v4908_v4 = vrot.slane %v4900_v2, %v6303_v35  ;;  %6121 = vtanh.f32 %v4721_v0  ;;  %v3333_v56 = vrot.slane %v7563_v11, %v7518_v7 }
 0x49d   :  { %v4915_v9 = vrot.slane %v4901_v3, %v6303_v35 }
 0x49f   :  { %v4916_v12 = vcombine.low %v4908_v4, %v4915_v9 }
 0x4a1   :  { %5012 = vst [vmem:[%s7639_s9 + $0x10] sm:$0xff] %v4916_v12 }
 0x4a2   :  { %v6116_v17 = vpop.eup %6115 }
 0x4a3   :  { %v6118_v18 = vpop.eup %6117  ;;  %v4782_v19 = vadd.f32 1.0, %v6116_v17  ;;  %v4412_v20 = vpop.f32.mrb[52].mxu0 }
 0x4a4   :  { %v4453_v21 = vpop.f32.mrb[52].mxu1  ;;  %v6120_v22 = vpop.eup %6119  ;;  %v4784_v23 = vadd.f32 1.0, %v6118_v18  ;;  %v4413_v30 = vadd.f32 %v4412_v20, %v3313_v13 }
 0x4a5   :  { %v4454_v24 = vadd.f32 %v4453_v21, %v3321_v14  ;;  %v4414_v25 = vpop.f32.mrb[53].mxu0  ;;  %v4455_v26 = vpop.f32.mrb[53].mxu1  ;;  %v4814_v28 = vmul.f32 0.5, %v4782_v19  ;;  %v4783_v29 = vadd.f32 1.0, %v6120_v22 }
 0x4a6   :  { %v6122_v27 = vpop.eup %6121  ;;  %v4415_v31 = vadd.f32 %v4414_v25, %v3317_v15  ;;  %v4456_v32 = vadd.f32 %v4455_v26, %v3325_v16  ;;  %v4416_v33 = vpop.f32.mrb[54].mxu0  ;;  %v4816_v36 = vmul.f32 0.5, %v4784_v23  ;;  %v4722_v38 = vmul.f32 0.5, %v4413_v30 }
 0x4a7   :  { %v4457_v34 = vpop.f32.mrb[54].mxu1  ;;  %v4785_v37 = vadd.f32 1.0, %v6122_v27  ;;  %v4724_v39 = vmul.f32 0.5, %v4454_v24  ;;  %v4417_v40 = vpop.f32.mrb[55].mxu0  ;;  %v4815_v42 = vmul.f32 0.5, %v4783_v29 }
 0x4a8   :  { %v4458_v41 = vpop.f32.mrb[55].mxu1  ;;  %v4723_v43 = vmul.f32 0.5, %v4415_v31  ;;  %v4725_v44 = vmul.f32 0.5, %v4456_v32  ;;  %6123 = vtanh.f32 %v4722_v38  ;;  %v7594_v31 = vld [vmem:[%s7638_s8 + $0x18] sm:$0xff] }
 0x4a9   :  { %v4817_v46 = vmul.f32 0.5, %v4785_v37  ;;  %v4917_v49 = vcombine.low %v4814_v28, %v4815_v42  ;;  %6125 = vtanh.f32 %v4724_v39  ;;  %v3345_v33 = vrot.slane %v7594_v31, %v7493_v59 }
 0x4aa   :  { %6127 = vtanh.f32 %v4723_v43  ;;  %v3353_v34 = vrot.slane %v7594_v31, %v7496_v45  ;;  %v3357_v37 = vrot.slane %v7594_v31, %v7505_v48 }
 0x4ab   :  { %v4918_v50 = vcombine.low %v4816_v36, %v4817_v46  ;;  %v4925_v51 = vrot.slane %v4917_v49, %v6303_v35  ;;  %6129 = vtanh.f32 %v4725_v44  ;;  %v3349_v36 = vrot.slane %v7594_v31, %v7502_v47 }
 0x4ad   :  { %v4932_v52 = vrot.slane %v4918_v50, %v6303_v35 }
 0x4af   :  { %v4933_v53 = vcombine.low %v4925_v51, %v4932_v52 }
 0x4b1   :  { %5013 = vst [vmem:[%s7639_s9 + $0x18] sm:$0xff] %v4933_v53 }
 0x4b2   :  { %v6124_v57 = vpop.eup %6123 }
 0x4b3   :  { %v6126_v58 = vpop.eup %6125  ;;  %v4786_v60 = vadd.f32 1.0, %v6124_v57  ;;  %v4494_v61 = vpop.f32.mrb[56].mxu0 }
 0x4b4   :  { %v4535_v62 = vpop.f32.mrb[56].mxu1  ;;  %v6128_v63 = vpop.eup %6127  ;;  %v4788_v0 = vadd.f32 1.0, %v6126_v58  ;;  %v4495_v1 = vadd.f32 %v4494_v61, %v3329_v54 }
 0x4b5   :  { %v4536_v2 = vadd.f32 %v4535_v62, %v3337_v55  ;;  %v4496_v3 = vpop.f32.mrb[57].mxu0  ;;  %v4537_v4 = vpop.f32.mrb[57].mxu1  ;;  %v4818_v12 = vmul.f32 0.5, %v4786_v60  ;;  %v4787_v13 = vadd.f32 1.0, %v6128_v63 }
 0x4b6   :  { %v6130_v9 = vpop.eup %6129  ;;  %v4497_v14 = vadd.f32 %v4496_v3, %v3333_v56  ;;  %v4538_v15 = vadd.f32 %v4537_v4, %v3341_v10  ;;  %v4498_v16 = vpop.f32.mrb[58].mxu0  ;;  %v4820_v18 = vmul.f32 0.5, %v4788_v0  ;;  %v4726_v19 = vmul.f32 0.5, %v4495_v1 }
 0x4b7   :  { %v4539_v17 = vpop.f32.mrb[58].mxu1  ;;  %v4789_v11 = vadd.f32 1.0, %v6130_v9  ;;  %v4728_v20 = vmul.f32 0.5, %v4536_v2  ;;  %v4499_v21 = vpop.f32.mrb[59].mxu0  ;;  %v4819_v23 = vmul.f32 0.5, %v4787_v13  ;;  %v3369_v13 = vrot.slane %v7594_v31, %v7515_v6 }
 0x4b8   :  { %v4540_v22 = vpop.f32.mrb[59].mxu1  ;;  %v4727_v30 = vmul.f32 0.5, %v4497_v14  ;;  %v4729_v24 = vmul.f32 0.5, %v4538_v15  ;;  %6131 = vtanh.f32 %v4726_v19  ;;  %v3365_v14 = vrot.slane %v7594_v31, %v7518_v7 }
 0x4b9   :  { %v4821_v25 = vmul.f32 0.5, %v4789_v11  ;;  %v4934_v26 = vcombine.low %v4818_v12, %v4819_v23  ;;  %6133 = vtanh.f32 %v4728_v20  ;;  %v3361_v12 = vrot.slane %v7594_v31, %v7512_v5 }
 0x4ba   :  { %6135 = vtanh.f32 %v4727_v30  ;;  %v3373_v15 = vrot.slane %v7594_v31, %v7521_v8 }
 0x4bb   :  { %v4935_v27 = vcombine.low %v4820_v18, %v4821_v25  ;;  %v4942_v28 = vrot.slane %v4934_v26, %v6303_v35  ;;  %6137 = vtanh.f32 %v4729_v24 }
 0x4bd   :  { %v4949_v29 = vrot.slane %v4935_v27, %v6303_v35 }
 0x4bf   :  { %v4950_v32 = vcombine.low %v4942_v28, %v4949_v29 }
 0x4c1   :  { %5014 = vst [vmem:[%s7639_s9 + $0x20] sm:$0xff] %v4950_v32 }
 0x4c2   :  { %v6132_v38 = vpop.eup %6131 }
 0x4c3   :  { %v6134_v39 = vpop.eup %6133  ;;  %v4790_v40 = vadd.f32 1.0, %v6132_v38  ;;  %v4576_v41 = vpop.f32.mrb[60].mxu0 }
 0x4c4   :  { %v4617_v42 = vpop.f32.mrb[60].mxu1  ;;  %v6136_v43 = vpop.eup %6135  ;;  %v4792_v44 = vadd.f32 1.0, %v6134_v39  ;;  %v4577_v46 = vadd.f32 %v4576_v41, %v3345_v33 }
 0x4c5   :  { %v4618_v49 = vadd.f32 %v4617_v42, %v3353_v34  ;;  %v4578_v50 = vpop.f32.mrb[61].mxu0  ;;  %v4619_v59 = vpop.f32.mrb[61].mxu1  ;;  %v4822_v52 = vmul.f32 0.5, %v4790_v40  ;;  %v4791_v45 = vadd.f32 1.0, %v6136_v43 }
 0x4c6   :  { %v6138_v51 = vpop.eup %6137  ;;  %v4579_v53 = vadd.f32 %v4578_v50, %v3349_v36  ;;  %v4620_v54 = vadd.f32 %v4619_v59, %v3357_v37  ;;  %v4580_v47 = vpop.f32.mrb[62].mxu0  ;;  %v4824_v56 = vmul.f32 0.5, %v4792_v44  ;;  %v4730_v10 = vmul.f32 0.5, %v4577_v46 }
 0x4c7   :  { %v4621_v55 = vpop.f32.mrb[62].mxu1  ;;  %v4793_v48 = vadd.f32 1.0, %v6138_v51  ;;  %v4732_v57 = vmul.f32 0.5, %v4618_v49  ;;  %v4581_v58 = vpop.f32.mrb[63].mxu0  ;;  %v4823_v61 = vmul.f32 0.5, %v4791_v45 }
 0x4c8   :  { %v4622_v60 = vpop.f32.mrb[63].mxu1  ;;  %v4731_v62 = vmul.f32 0.5, %v4579_v53  ;;  %v4733_v63 = vmul.f32 0.5, %v4620_v54  ;;  %6139 = vtanh.f32 %v4730_v10 }
 0x4c9   :  { %v4825_v0 = vmul.f32 0.5, %v4793_v48  ;;  %v4951_v1 = vcombine.low %v4822_v52, %v4823_v61  ;;  %6141 = vtanh.f32 %v4732_v57 }
 0x4ca   :  { %6143 = vtanh.f32 %v4731_v62 }
 0x4cb   :  { %v4952_v2 = vcombine.low %v4824_v56, %v4825_v0  ;;  %v4959_v3 = vrot.slane %v4951_v1, %v6303_v35  ;;  %6145 = vtanh.f32 %v4733_v63 }
 0x4cd   :  { %v4966_v4 = vrot.slane %v4952_v2, %v6303_v35 }
 0x4cf   :  { %v4967_v9 = vcombine.low %v4959_v3, %v4966_v4 }
 0x4d1   :  { %5015 = vst [vmem:[%s7639_s9 + $0x28] sm:$0xff] %v4967_v9 }
 0x4d2   :  { %v6140_v16 = vpop.eup %6139 }
 0x4d3   :  { %v6142_v17 = vpop.eup %6141  ;;  %v4794_v18 = vadd.f32 1.0, %v6140_v16  ;;  %v4658_v11 = vpop.f32.mrb[64].mxu0 }
 0x4d4   :  { %v4699_v19 = vpop.f32.mrb[64].mxu1  ;;  %v6144_v20 = vpop.eup %6143  ;;  %v4796_v21 = vadd.f32 1.0, %v6142_v17  ;;  %v4659_v22 = vadd.f32 %v4658_v11, %v3361_v12 }
 0x4d5   :  { %v4700_v23 = vadd.f32 %v4699_v19, %v3369_v13  ;;  %v4660_v30 = vpop.f32.mrb[65].mxu0  ;;  %v4701_v5 = vpop.f32.mrb[65].mxu1  ;;  %v4826_v25 = vmul.f32 0.5, %v4794_v18  ;;  %v4795_v6 = vadd.f32 1.0, %v6144_v20 }
 0x4d6   :  { %v6146_v24 = vpop.eup %6145  ;;  %v4661_v26 = vadd.f32 %v4660_v30, %v3365_v14  ;;  %v4702_v27 = vadd.f32 %v4701_v5, %v3373_v15  ;;  %v4662_v7 = vpop.f32.mrb[66].mxu0  ;;  %v4828_v29 = vmul.f32 0.5, %v4796_v21  ;;  %v4734_v31 = vmul.f32 0.5, %v4659_v22 }
 0x4d7   :  { %v4703_v28 = vpop.f32.mrb[66].mxu1  ;;  %v4797_v8 = vadd.f32 1.0, %v6146_v24  ;;  %v4736_v32 = vmul.f32 0.5, %v4700_v23  ;;  %v4663_v33 = vpop.f32.mrb[67].mxu0  ;;  %v4827_v36 = vmul.f32 0.5, %v4795_v6 }
 0x4d8   :  { %v4704_v34 = vpop.f32.mrb[67].mxu1  ;;  %v4735_v37 = vmul.f32 0.5, %v4661_v26  ;;  %v4737_v38 = vmul.f32 0.5, %v4702_v27  ;;  %6147 = vtanh.f32 %v4734_v31 }
 0x4d9   :  { %v4829_v39 = vmul.f32 0.5, %v4797_v8  ;;  %v4968_v40 = vcombine.low %v4826_v25, %v4827_v36  ;;  %6149 = vtanh.f32 %v4736_v32 }
 0x4da   :  { %6151 = vtanh.f32 %v4735_v37 }
 0x4db   :  { %v4969_v41 = vcombine.low %v4828_v29, %v4829_v39  ;;  %v4976_v42 = vrot.slane %v4968_v40, %v6303_v35  ;;  %6153 = vtanh.f32 %v4737_v38 }
 0x4dd   :  { %v4983_v43 = vrot.slane %v4969_v41, %v6303_v35 }
 0x4df   :  { %v4984_v44 = vcombine.low %v4976_v42, %v4983_v43 }
 0x4e1   :  { %5016 = vst [vmem:[%s7639_s9 + $0x30] sm:$0xff] %v4984_v44 }
 0x4e2   :  { %v6148_v46 = vpop.eup %6147 }
 0x4e3   :  { %v6150_v49 = vpop.eup %6149  ;;  %v4798_v50 = vadd.f32 1.0, %v6148_v46 }
 0x4e4   :  { %v6152_v59 = vpop.eup %6151  ;;  %v4800_v51 = vadd.f32 1.0, %v6150_v49 }
 0x4e5   :  { %v6154_v52 = vpop.eup %6153  ;;  %v4830_v45 = vmul.f32 0.5, %v4798_v50  ;;  %v4799_v53 = vadd.f32 1.0, %v6152_v59 }
 0x4e6   :  { %v4832_v54 = vmul.f32 0.5, %v4800_v51  ;;  %v4801_v47 = vadd.f32 1.0, %v6154_v52 }
 0x4e7   :  { %v4831_v55 = vmul.f32 0.5, %v4799_v53 }
 0x4e8   :  { %v4833_v56 = vmul.f32 0.5, %v4801_v47 }
 0x4e9   :  { %v4985_v48 = vcombine.low %v4830_v45, %v4831_v55 }
 0x4ea   :  { %v4986_v10 = vcombine.low %v4832_v54, %v4833_v56 }
 0x4eb   :  { %v4993_v57 = vrot.slane %v4985_v48, %v6303_v35 }
 0x4ec   :  { %v5000_v58 = vrot.slane %v4986_v10, %v6303_v35 }
 0x4ee   :  { %v5001_v60 = vcombine.low %v4993_v57, %v5000_v58 }
 0x4f0   :  { %5017 = vst [vmem:[%s7639_s9 + $0x38] sm:$0xff] %v5001_v60 }

</bundles_post_ra>
